<compile_context>
chip_gen: v5e
topology: v5e:2x2
jax: 0.10.0
libtpu: 0.0.40
codegen_flags: <defaults>
</compile_context>

<pallas_src>
import jax
import jax.numpy as jnp
from jax import lax
from jax.experimental import pallas as pl
from jax.experimental.pallas import tpu as pltpu

CHUNK_R = 8  # sublane-rows (of 128 lanes each) processed per inner-loop step


def _round_up(n, m):
    return ((n + m - 1) // m) * m


def mlp_kernel(w1_ref, b1_ref, w2_ref, b2_ref, w3_ref, b3_ref, x_ref, o_ref):
    """One batch tile.

    x_ref: (5, TILE_R, 128) VMEM, o_ref: (2, TILE_R, 128) VMEM.
    Weights/biases are whole-array SMEM refs in torch layout
    (w: (out_f, in_f), b: (out_f,)).
    """
    tile_r = x_ref.shape[1]
    n_chunks = tile_r // CHUNK_R

    def layer(rows_in, w_ref, b_ref, out_f, in_f, relu):
        rows_out = []
        for j in range(out_f):
            acc = rows_in[0] * w_ref[j, 0] + b_ref[j]
            for k in range(1, in_f):
                acc = acc + rows_in[k] * w_ref[j, k]
            if relu:
                acc = jnp.maximum(acc, 0.0)
            rows_out.append(acc)
        return rows_out

    def chunk_body(c, carry):
        r0 = pl.multiple_of(c * CHUNK_R, CHUNK_R)
        # Each row is a dense (CHUNK_R, 128) f32 block (CHUNK_R/8 vregs).
        x_rows = [x_ref[k, pl.ds(r0, CHUNK_R), :] for k in range(5)]
        h1 = layer(x_rows, w1_ref, b1_ref, 10, 5, relu=True)     # Linear(5->10)+ReLU
        h2 = layer(h1, w2_ref, b2_ref, 10, 10, relu=True)        # Linear(10->10)+ReLU
        out = layer(h2, w3_ref, b3_ref, 2, 10, relu=False)       # Linear(10->2)
        o_ref[0, pl.ds(r0, CHUNK_R), :] = out[0].astype(o_ref.dtype)
        o_ref[1, pl.ds(r0, CHUNK_R), :] = out[1].astype(o_ref.dtype)
        return carry

    unroll = True if n_chunks <= 4 else 2
    lax.fori_loop(0, n_chunks, chunk_body, 0, unroll=unroll)


def test_model_multi_forward(x, params, *, tile_r=None):
    """x: (B, 5) float32. params: torch-layout weights/biases. Returns (B, 2)."""
    B = x.shape[0]
    R = pl.cdiv(B, 128)  # sublane-rows of batch

    if tile_r is None:
        # Split into >=2 tiles when possible (v7x megacore), cap at 512 rows
        # (= 64K batch elements, ~3.7 MiB double-buffered -> fits every gen),
        # keep a multiple of CHUNK_R so the inner chunk loop divides evenly.
        half = pl.cdiv(R, 2)
        tile_r = max(CHUNK_R, min(512, _round_up(half, CHUNK_R)))
    assert tile_r % CHUNK_R == 0

    r_pad = _round_up(R, tile_r)
    b_pad = r_pad * 128
    grid = (r_pad // tile_r,)

    # (features, rows, lanes) layout; batch index b = row*128 + lane.
    xp = jnp.pad(x.astype(jnp.float32), ((0, b_pad - B), (0, 0)))
    xT = xp.T.reshape(5, r_pad, 128)

    w1, b1 = params["w1"], params["b1"]   # (10, 5), (10,)
    w2, b2 = params["w2"], params["b2"]   # (10, 10), (10,)
    w3, b3 = params["w3"], params["b3"]   # (2, 10), (2,)

    smem_spec = pl.BlockSpec(memory_space=pltpu.MemorySpace.SMEM)

    flops = 2 * B * (5 * 10 + 10 * 10 + 10 * 2)
    bytes_accessed = 4 * (B * 5 + B * 2 + 10 * 5 + 10 + 10 * 10 + 10 + 2 * 10 + 2)

    outT = pl.pallas_call(
        mlp_kernel,
        out_shape=jax.ShapeDtypeStruct((2, r_pad, 128), jnp.float32),
        grid=grid,
        in_specs=[
            smem_spec, smem_spec,                               # w1, b1 (resident)
            smem_spec, smem_spec,                               # w2, b2 (resident)
            smem_spec, smem_spec,                               # w3, b3 (resident)
            pl.BlockSpec((5, tile_r, 128), lambda i: (0, i, 0)),  # x tile (pipelined)
        ],
        out_specs=pl.BlockSpec((2, tile_r, 128), lambda i: (0, i, 0)),
        compiler_params=pltpu.CompilerParams(
            dimension_semantics=("parallel",)),
        cost_estimate=pl.CostEstimate(
            flops=flops, transcendentals=0, bytes_accessed=bytes_accessed),
    )(w1, b1, w2, b2, w3, b3, xT)

    # Back to the module's (batch, 2) layout; drop batch padding.
    return outT.reshape(2, b_pad)[:, :B].T


def init_params(key):
    """Deterministic init mimicking nn.Linear default: U(-1/sqrt(fan_in), 1/sqrt(fan_in))."""
    def linear_init(k, out_f, in_f):
        kw, kb = jax.random.split(k)
        bound = 1.0 / jnp.sqrt(jnp.float32(in_f))
        w = jax.random.uniform(kw, (out_f, in_f), jnp.float32, -bound, bound)
        b = jax.random.uniform(kb, (out_f,), jnp.float32, -bound, bound)
        return w, b

    k1, k2, k3 = jax.random.split(key, 3)
    w1, b1 = linear_init(k1, 10, 5)
    w2, b2 = linear_init(k2, 10, 10)
    w3, b3 = linear_init(k3, 2, 10)
    return {"w1": w1, "b1": b1, "w2": w2, "b2": b2, "w3": w3, "b3": b3}


def reference_forward(x, p):
    h = jnp.maximum(x @ p["w1"].T + p["b1"], 0.0)
    h = jnp.maximum(h @ p["w2"].T + p["b2"], 0.0)
    return h @ p["w3"].T + p["b3"]


if __name__ == "__main__":
    key = jax.random.PRNGKey(0)
    kx, kx2, kp = jax.random.split(key, 3)
    params = init_params(kp)

    # Small batch (single 8-row tile, padded to 1024 lanes).
    B = 8
    x = jax.random.normal(kx, (B, 5), jnp.float32)
    out = jax.block_until_ready(test_model_multi_forward(x, params))
    ref = reference_forward(x, params)
    assert out.shape == (B, 2), out.shape
    assert jnp.allclose(out, ref, atol=1e-5, rtol=1e-5), "mismatch (B=8)"

    # Larger, non-tile-multiple batch: exercises the multi-step parallel grid,
    # the inner chunk loop, and the padding / slice-back path.
    B2 = 2500
    x2 = jax.random.normal(kx2, (B2, 5), jnp.float32)
    out2 = jax.block_until_ready(test_model_multi_forward(x2, params))
    ref2 = reference_forward(x2, params)
    assert out2.shape == (B2, 2), out2.shape
    assert jnp.allclose(out2, ref2, atol=1e-5, rtol=1e-4), "mismatch (B=2500)"

    print("KERNEL_OK")
</pallas_src>

<mosaic_0001>
module attributes {stable_mosaic.version = 11 : i64} {
  func.func @mlp_kernel(%arg0: i32, %arg1: memref<10x5xf32, #tpu.memory_space<smem>>, %arg2: memref<10xf32, #tpu.memory_space<smem>>, %arg3: memref<10x10xf32, #tpu.memory_space<smem>>, %arg4: memref<10xf32, #tpu.memory_space<smem>>, %arg5: memref<2x10xf32, #tpu.memory_space<smem>>, %arg6: memref<2xf32, #tpu.memory_space<smem>>, %arg7: memref<5x8x128xf32, #tpu.memory_space<vmem>>, %arg8: memref<2x8x128xf32, #tpu.memory_space<vmem>>) attributes {dimension_semantics = [#tpu.dimension_semantics<parallel>], iteration_bounds = array<i64: 1>, scalar_prefetch = 0 : i64, scratch_operands = 0 : i64, tpu.core_type = #tpu.core_type<tc>, window_params = [{transform_indices = @transform_0, window_bounds = array<i64: 10, 5>}, {transform_indices = @transform_1, window_bounds = array<i64: 10>}, {transform_indices = @transform_2, window_bounds = array<i64: 10, 10>}, {transform_indices = @transform_3, window_bounds = array<i64: 10>}, {transform_indices = @transform_4, window_bounds = array<i64: 2, 10>}, {transform_indices = @transform_5, window_bounds = array<i64: 2>}, {transform_indices = @transform_6, window_bounds = array<i64: 5, 8, 128>}, {transform_indices = @transform_7, window_bounds = array<i64: 2, 8, 128>}]} {
    %c0_i32 = arith.constant 0 : i32
    %c8_i32 = arith.constant 8 : i32
    %0 = arith.muli %c0_i32, %c8_i32 : i32
    %1 = tpu.assume_multiple %0, 8 : i32
    %c0 = arith.constant 0 : index
    %2 = arith.index_cast %1 : i32 to index
    %c0_0 = arith.constant 0 : index
    %3 = vector.load %arg7[%c0, %2, %c0_0] : memref<5x8x128xf32, #tpu.memory_space<vmem>>, vector<1x8x128xf32>
    %4 = vector.shape_cast %3 : vector<1x8x128xf32> to vector<8x128xf32>
    %c1 = arith.constant 1 : index
    %5 = arith.index_cast %1 : i32 to index
    %c0_1 = arith.constant 0 : index
    %6 = vector.load %arg7[%c1, %5, %c0_1] : memref<5x8x128xf32, #tpu.memory_space<vmem>>, vector<1x8x128xf32>
    %7 = vector.shape_cast %6 : vector<1x8x128xf32> to vector<8x128xf32>
    %c2 = arith.constant 2 : index
    %8 = arith.index_cast %1 : i32 to index
    %c0_2 = arith.constant 0 : index
    %9 = vector.load %arg7[%c2, %8, %c0_2] : memref<5x8x128xf32, #tpu.memory_space<vmem>>, vector<1x8x128xf32>
    %10 = vector.shape_cast %9 : vector<1x8x128xf32> to vector<8x128xf32>
    %c3 = arith.constant 3 : index
    %11 = arith.index_cast %1 : i32 to index
    %c0_3 = arith.constant 0 : index
    %12 = vector.load %arg7[%c3, %11, %c0_3] : memref<5x8x128xf32, #tpu.memory_space<vmem>>, vector<1x8x128xf32>
    %13 = vector.shape_cast %12 : vector<1x8x128xf32> to vector<8x128xf32>
    %c4 = arith.constant 4 : index
    %14 = arith.index_cast %1 : i32 to index
    %c0_4 = arith.constant 0 : index
    %15 = vector.load %arg7[%c4, %14, %c0_4] : memref<5x8x128xf32, #tpu.memory_space<vmem>>, vector<1x8x128xf32>
    %16 = vector.shape_cast %15 : vector<1x8x128xf32> to vector<8x128xf32>
    %c0_5 = arith.constant 0 : index
    %c0_6 = arith.constant 0 : index
    %17 = memref.load %arg1[%c0_5, %c0_6] : memref<10x5xf32, #tpu.memory_space<smem>>
    %18 = vector.broadcast %17 : f32 to vector<8x128xf32>
    %19 = arith.mulf %4, %18 : vector<8x128xf32>
    %c0_7 = arith.constant 0 : index
    %20 = memref.load %arg2[%c0_7] : memref<10xf32, #tpu.memory_space<smem>>
    %21 = vector.broadcast %20 : f32 to vector<8x128xf32>
    %22 = arith.addf %19, %21 : vector<8x128xf32>
    %c0_8 = arith.constant 0 : index
    %c1_9 = arith.constant 1 : index
    %23 = memref.load %arg1[%c0_8, %c1_9] : memref<10x5xf32, #tpu.memory_space<smem>>
    %24 = vector.broadcast %23 : f32 to vector<8x128xf32>
    %25 = arith.mulf %7, %24 : vector<8x128xf32>
    %26 = arith.addf %22, %25 : vector<8x128xf32>
    %c0_10 = arith.constant 0 : index
    %c2_11 = arith.constant 2 : index
    %27 = memref.load %arg1[%c0_10, %c2_11] : memref<10x5xf32, #tpu.memory_space<smem>>
    %28 = vector.broadcast %27 : f32 to vector<8x128xf32>
    %29 = arith.mulf %10, %28 : vector<8x128xf32>
    %30 = arith.addf %26, %29 : vector<8x128xf32>
    %c0_12 = arith.constant 0 : index
    %c3_13 = arith.constant 3 : index
    %31 = memref.load %arg1[%c0_12, %c3_13] : memref<10x5xf32, #tpu.memory_space<smem>>
    %32 = vector.broadcast %31 : f32 to vector<8x128xf32>
    %33 = arith.mulf %13, %32 : vector<8x128xf32>
    %34 = arith.addf %30, %33 : vector<8x128xf32>
    %c0_14 = arith.constant 0 : index
    %c4_15 = arith.constant 4 : index
    %35 = memref.load %arg1[%c0_14, %c4_15] : memref<10x5xf32, #tpu.memory_space<smem>>
    %36 = vector.broadcast %35 : f32 to vector<8x128xf32>
    %37 = arith.mulf %16, %36 : vector<8x128xf32>
    %38 = arith.addf %34, %37 : vector<8x128xf32>
    %cst = arith.constant 0.000000e+00 : f32
    %39 = vector.broadcast %cst : f32 to vector<8x128xf32>
    %40 = arith.maximumf %38, %39 : vector<8x128xf32>
    %c1_16 = arith.constant 1 : index
    %c0_17 = arith.constant 0 : index
    %41 = memref.load %arg1[%c1_16, %c0_17] : memref<10x5xf32, #tpu.memory_space<smem>>
    %42 = vector.broadcast %41 : f32 to vector<8x128xf32>
    %43 = arith.mulf %4, %42 : vector<8x128xf32>
    %c1_18 = arith.constant 1 : index
    %44 = memref.load %arg2[%c1_18] : memref<10xf32, #tpu.memory_space<smem>>
    %45 = vector.broadcast %44 : f32 to vector<8x128xf32>
    %46 = arith.addf %43, %45 : vector<8x128xf32>
    %c1_19 = arith.constant 1 : index
    %c1_20 = arith.constant 1 : index
    %47 = memref.load %arg1[%c1_19, %c1_20] : memref<10x5xf32, #tpu.memory_space<smem>>
    %48 = vector.broadcast %47 : f32 to vector<8x128xf32>
    %49 = arith.mulf %7, %48 : vector<8x128xf32>
    %50 = arith.addf %46, %49 : vector<8x128xf32>
    %c1_21 = arith.constant 1 : index
    %c2_22 = arith.constant 2 : index
    %51 = memref.load %arg1[%c1_21, %c2_22] : memref<10x5xf32, #tpu.memory_space<smem>>
    %52 = vector.broadcast %51 : f32 to vector<8x128xf32>
    %53 = arith.mulf %10, %52 : vector<8x128xf32>
    %54 = arith.addf %50, %53 : vector<8x128xf32>
    %c1_23 = arith.constant 1 : index
    %c3_24 = arith.constant 3 : index
    %55 = memref.load %arg1[%c1_23, %c3_24] : memref<10x5xf32, #tpu.memory_space<smem>>
    %56 = vector.broadcast %55 : f32 to vector<8x128xf32>
    %57 = arith.mulf %13, %56 : vector<8x128xf32>
    %58 = arith.addf %54, %57 : vector<8x128xf32>
    %c1_25 = arith.constant 1 : index
    %c4_26 = arith.constant 4 : index
    %59 = memref.load %arg1[%c1_25, %c4_26] : memref<10x5xf32, #tpu.memory_space<smem>>
    %60 = vector.broadcast %59 : f32 to vector<8x128xf32>
    %61 = arith.mulf %16, %60 : vector<8x128xf32>
    %62 = arith.addf %58, %61 : vector<8x128xf32>
    %cst_27 = arith.constant 0.000000e+00 : f32
    %63 = vector.broadcast %cst_27 : f32 to vector<8x128xf32>
    %64 = arith.maximumf %62, %63 : vector<8x128xf32>
    %c2_28 = arith.constant 2 : index
    %c0_29 = arith.constant 0 : index
    %65 = memref.load %arg1[%c2_28, %c0_29] : memref<10x5xf32, #tpu.memory_space<smem>>
    %66 = vector.broadcast %65 : f32 to vector<8x128xf32>
    %67 = arith.mulf %4, %66 : vector<8x128xf32>
    %c2_30 = arith.constant 2 : index
    %68 = memref.load %arg2[%c2_30] : memref<10xf32, #tpu.memory_space<smem>>
    %69 = vector.broadcast %68 : f32 to vector<8x128xf32>
    %70 = arith.addf %67, %69 : vector<8x128xf32>
    %c2_31 = arith.constant 2 : index
    %c1_32 = arith.constant 1 : index
    %71 = memref.load %arg1[%c2_31, %c1_32] : memref<10x5xf32, #tpu.memory_space<smem>>
    %72 = vector.broadcast %71 : f32 to vector<8x128xf32>
    %73 = arith.mulf %7, %72 : vector<8x128xf32>
    %74 = arith.addf %70, %73 : vector<8x128xf32>
    %c2_33 = arith.constant 2 : index
    %c2_34 = arith.constant 2 : index
    %75 = memref.load %arg1[%c2_33, %c2_34] : memref<10x5xf32, #tpu.memory_space<smem>>
    %76 = vector.broadcast %75 : f32 to vector<8x128xf32>
    %77 = arith.mulf %10, %76 : vector<8x128xf32>
    %78 = arith.addf %74, %77 : vector<8x128xf32>
    %c2_35 = arith.constant 2 : index
    %c3_36 = arith.constant 3 : index
    %79 = memref.load %arg1[%c2_35, %c3_36] : memref<10x5xf32, #tpu.memory_space<smem>>
    %80 = vector.broadcast %79 : f32 to vector<8x128xf32>
    %81 = arith.mulf %13, %80 : vector<8x128xf32>
    %82 = arith.addf %78, %81 : vector<8x128xf32>
    %c2_37 = arith.constant 2 : index
    %c4_38 = arith.constant 4 : index
    %83 = memref.load %arg1[%c2_37, %c4_38] : memref<10x5xf32, #tpu.memory_space<smem>>
    %84 = vector.broadcast %83 : f32 to vector<8x128xf32>
    %85 = arith.mulf %16, %84 : vector<8x128xf32>
    %86 = arith.addf %82, %85 : vector<8x128xf32>
    %cst_39 = arith.constant 0.000000e+00 : f32
    %87 = vector.broadcast %cst_39 : f32 to vector<8x128xf32>
    %88 = arith.maximumf %86, %87 : vector<8x128xf32>
    %c3_40 = arith.constant 3 : index
    %c0_41 = arith.constant 0 : index
    %89 = memref.load %arg1[%c3_40, %c0_41] : memref<10x5xf32, #tpu.memory_space<smem>>
    %90 = vector.broadcast %89 : f32 to vector<8x128xf32>
    %91 = arith.mulf %4, %90 : vector<8x128xf32>
    %c3_42 = arith.constant 3 : index
    %92 = memref.load %arg2[%c3_42] : memref<10xf32, #tpu.memory_space<smem>>
    %93 = vector.broadcast %92 : f32 to vector<8x128xf32>
    %94 = arith.addf %91, %93 : vector<8x128xf32>
    %c3_43 = arith.constant 3 : index
    %c1_44 = arith.constant 1 : index
    %95 = memref.load %arg1[%c3_43, %c1_44] : memref<10x5xf32, #tpu.memory_space<smem>>
    %96 = vector.broadcast %95 : f32 to vector<8x128xf32>
    %97 = arith.mulf %7, %96 : vector<8x128xf32>
    %98 = arith.addf %94, %97 : vector<8x128xf32>
    %c3_45 = arith.constant 3 : index
    %c2_46 = arith.constant 2 : index
    %99 = memref.load %arg1[%c3_45, %c2_46] : memref<10x5xf32, #tpu.memory_space<smem>>
    %100 = vector.broadcast %99 : f32 to vector<8x128xf32>
    %101 = arith.mulf %10, %100 : vector<8x128xf32>
    %102 = arith.addf %98, %101 : vector<8x128xf32>
    %c3_47 = arith.constant 3 : index
    %c3_48 = arith.constant 3 : index
    %103 = memref.load %arg1[%c3_47, %c3_48] : memref<10x5xf32, #tpu.memory_space<smem>>
    %104 = vector.broadcast %103 : f32 to vector<8x128xf32>
    %105 = arith.mulf %13, %104 : vector<8x128xf32>
    %106 = arith.addf %102, %105 : vector<8x128xf32>
    %c3_49 = arith.constant 3 : index
    %c4_50 = arith.constant 4 : index
    %107 = memref.load %arg1[%c3_49, %c4_50] : memref<10x5xf32, #tpu.memory_space<smem>>
    %108 = vector.broadcast %107 : f32 to vector<8x128xf32>
    %109 = arith.mulf %16, %108 : vector<8x128xf32>
    %110 = arith.addf %106, %109 : vector<8x128xf32>
    %cst_51 = arith.constant 0.000000e+00 : f32
    %111 = vector.broadcast %cst_51 : f32 to vector<8x128xf32>
    %112 = arith.maximumf %110, %111 : vector<8x128xf32>
    %c4_52 = arith.constant 4 : index
    %c0_53 = arith.constant 0 : index
    %113 = memref.load %arg1[%c4_52, %c0_53] : memref<10x5xf32, #tpu.memory_space<smem>>
    %114 = vector.broadcast %113 : f32 to vector<8x128xf32>
    %115 = arith.mulf %4, %114 : vector<8x128xf32>
    %c4_54 = arith.constant 4 : index
    %116 = memref.load %arg2[%c4_54] : memref<10xf32, #tpu.memory_space<smem>>
    %117 = vector.broadcast %116 : f32 to vector<8x128xf32>
    %118 = arith.addf %115, %117 : vector<8x128xf32>
    %c4_55 = arith.constant 4 : index
    %c1_56 = arith.constant 1 : index
    %119 = memref.load %arg1[%c4_55, %c1_56] : memref<10x5xf32, #tpu.memory_space<smem>>
    %120 = vector.broadcast %119 : f32 to vector<8x128xf32>
    %121 = arith.mulf %7, %120 : vector<8x128xf32>
    %122 = arith.addf %118, %121 : vector<8x128xf32>
    %c4_57 = arith.constant 4 : index
    %c2_58 = arith.constant 2 : index
    %123 = memref.load %arg1[%c4_57, %c2_58] : memref<10x5xf32, #tpu.memory_space<smem>>
    %124 = vector.broadcast %123 : f32 to vector<8x128xf32>
    %125 = arith.mulf %10, %124 : vector<8x128xf32>
    %126 = arith.addf %122, %125 : vector<8x128xf32>
    %c4_59 = arith.constant 4 : index
    %c3_60 = arith.constant 3 : index
    %127 = memref.load %arg1[%c4_59, %c3_60] : memref<10x5xf32, #tpu.memory_space<smem>>
    %128 = vector.broadcast %127 : f32 to vector<8x128xf32>
    %129 = arith.mulf %13, %128 : vector<8x128xf32>
    %130 = arith.addf %126, %129 : vector<8x128xf32>
    %c4_61 = arith.constant 4 : index
    %c4_62 = arith.constant 4 : index
    %131 = memref.load %arg1[%c4_61, %c4_62] : memref<10x5xf32, #tpu.memory_space<smem>>
    %132 = vector.broadcast %131 : f32 to vector<8x128xf32>
    %133 = arith.mulf %16, %132 : vector<8x128xf32>
    %134 = arith.addf %130, %133 : vector<8x128xf32>
    %cst_63 = arith.constant 0.000000e+00 : f32
    %135 = vector.broadcast %cst_63 : f32 to vector<8x128xf32>
    %136 = arith.maximumf %134, %135 : vector<8x128xf32>
    %c5 = arith.constant 5 : index
    %c0_64 = arith.constant 0 : index
    %137 = memref.load %arg1[%c5, %c0_64] : memref<10x5xf32, #tpu.memory_space<smem>>
    %138 = vector.broadcast %137 : f32 to vector<8x128xf32>
    %139 = arith.mulf %4, %138 : vector<8x128xf32>
    %c5_65 = arith.constant 5 : index
    %140 = memref.load %arg2[%c5_65] : memref<10xf32, #tpu.memory_space<smem>>
    %141 = vector.broadcast %140 : f32 to vector<8x128xf32>
    %142 = arith.addf %139, %141 : vector<8x128xf32>
    %c5_66 = arith.constant 5 : index
    %c1_67 = arith.constant 1 : index
    %143 = memref.load %arg1[%c5_66, %c1_67] : memref<10x5xf32, #tpu.memory_space<smem>>
    %144 = vector.broadcast %143 : f32 to vector<8x128xf32>
    %145 = arith.mulf %7, %144 : vector<8x128xf32>
    %146 = arith.addf %142, %145 : vector<8x128xf32>
    %c5_68 = arith.constant 5 : index
    %c2_69 = arith.constant 2 : index
    %147 = memref.load %arg1[%c5_68, %c2_69] : memref<10x5xf32, #tpu.memory_space<smem>>
    %148 = vector.broadcast %147 : f32 to vector<8x128xf32>
    %149 = arith.mulf %10, %148 : vector<8x128xf32>
    %150 = arith.addf %146, %149 : vector<8x128xf32>
    %c5_70 = arith.constant 5 : index
    %c3_71 = arith.constant 3 : index
    %151 = memref.load %arg1[%c5_70, %c3_71] : memref<10x5xf32, #tpu.memory_space<smem>>
    %152 = vector.broadcast %151 : f32 to vector<8x128xf32>
    %153 = arith.mulf %13, %152 : vector<8x128xf32>
    %154 = arith.addf %150, %153 : vector<8x128xf32>
    %c5_72 = arith.constant 5 : index
    %c4_73 = arith.constant 4 : index
    %155 = memref.load %arg1[%c5_72, %c4_73] : memref<10x5xf32, #tpu.memory_space<smem>>
    %156 = vector.broadcast %155 : f32 to vector<8x128xf32>
    %157 = arith.mulf %16, %156 : vector<8x128xf32>
    %158 = arith.addf %154, %157 : vector<8x128xf32>
    %cst_74 = arith.constant 0.000000e+00 : f32
    %159 = vector.broadcast %cst_74 : f32 to vector<8x128xf32>
    %160 = arith.maximumf %158, %159 : vector<8x128xf32>
    %c6 = arith.constant 6 : index
    %c0_75 = arith.constant 0 : index
    %161 = memref.load %arg1[%c6, %c0_75] : memref<10x5xf32, #tpu.memory_space<smem>>
    %162 = vector.broadcast %161 : f32 to vector<8x128xf32>
    %163 = arith.mulf %4, %162 : vector<8x128xf32>
    %c6_76 = arith.constant 6 : index
    %164 = memref.load %arg2[%c6_76] : memref<10xf32, #tpu.memory_space<smem>>
    %165 = vector.broadcast %164 : f32 to vector<8x128xf32>
    %166 = arith.addf %163, %165 : vector<8x128xf32>
    %c6_77 = arith.constant 6 : index
    %c1_78 = arith.constant 1 : index
    %167 = memref.load %arg1[%c6_77, %c1_78] : memref<10x5xf32, #tpu.memory_space<smem>>
    %168 = vector.broadcast %167 : f32 to vector<8x128xf32>
    %169 = arith.mulf %7, %168 : vector<8x128xf32>
    %170 = arith.addf %166, %169 : vector<8x128xf32>
    %c6_79 = arith.constant 6 : index
    %c2_80 = arith.constant 2 : index
    %171 = memref.load %arg1[%c6_79, %c2_80] : memref<10x5xf32, #tpu.memory_space<smem>>
    %172 = vector.broadcast %171 : f32 to vector<8x128xf32>
    %173 = arith.mulf %10, %172 : vector<8x128xf32>
    %174 = arith.addf %170, %173 : vector<8x128xf32>
    %c6_81 = arith.constant 6 : index
    %c3_82 = arith.constant 3 : index
    %175 = memref.load %arg1[%c6_81, %c3_82] : memref<10x5xf32, #tpu.memory_space<smem>>
    %176 = vector.broadcast %175 : f32 to vector<8x128xf32>
    %177 = arith.mulf %13, %176 : vector<8x128xf32>
    %178 = arith.addf %174, %177 : vector<8x128xf32>
    %c6_83 = arith.constant 6 : index
    %c4_84 = arith.constant 4 : index
    %179 = memref.load %arg1[%c6_83, %c4_84] : memref<10x5xf32, #tpu.memory_space<smem>>
    %180 = vector.broadcast %179 : f32 to vector<8x128xf32>
    %181 = arith.mulf %16, %180 : vector<8x128xf32>
    %182 = arith.addf %178, %181 : vector<8x128xf32>
    %cst_85 = arith.constant 0.000000e+00 : f32
    %183 = vector.broadcast %cst_85 : f32 to vector<8x128xf32>
    %184 = arith.maximumf %182, %183 : vector<8x128xf32>
    %c7 = arith.constant 7 : index
    %c0_86 = arith.constant 0 : index
    %185 = memref.load %arg1[%c7, %c0_86] : memref<10x5xf32, #tpu.memory_space<smem>>
    %186 = vector.broadcast %185 : f32 to vector<8x128xf32>
    %187 = arith.mulf %4, %186 : vector<8x128xf32>
    %c7_87 = arith.constant 7 : index
    %188 = memref.load %arg2[%c7_87] : memref<10xf32, #tpu.memory_space<smem>>
    %189 = vector.broadcast %188 : f32 to vector<8x128xf32>
    %190 = arith.addf %187, %189 : vector<8x128xf32>
    %c7_88 = arith.constant 7 : index
    %c1_89 = arith.constant 1 : index
    %191 = memref.load %arg1[%c7_88, %c1_89] : memref<10x5xf32, #tpu.memory_space<smem>>
    %192 = vector.broadcast %191 : f32 to vector<8x128xf32>
    %193 = arith.mulf %7, %192 : vector<8x128xf32>
    %194 = arith.addf %190, %193 : vector<8x128xf32>
    %c7_90 = arith.constant 7 : index
    %c2_91 = arith.constant 2 : index
    %195 = memref.load %arg1[%c7_90, %c2_91] : memref<10x5xf32, #tpu.memory_space<smem>>
    %196 = vector.broadcast %195 : f32 to vector<8x128xf32>
    %197 = arith.mulf %10, %196 : vector<8x128xf32>
    %198 = arith.addf %194, %197 : vector<8x128xf32>
    %c7_92 = arith.constant 7 : index
    %c3_93 = arith.constant 3 : index
    %199 = memref.load %arg1[%c7_92, %c3_93] : memref<10x5xf32, #tpu.memory_space<smem>>
    %200 = vector.broadcast %199 : f32 to vector<8x128xf32>
    %201 = arith.mulf %13, %200 : vector<8x128xf32>
    %202 = arith.addf %198, %201 : vector<8x128xf32>
    %c7_94 = arith.constant 7 : index
    %c4_95 = arith.constant 4 : index
    %203 = memref.load %arg1[%c7_94, %c4_95] : memref<10x5xf32, #tpu.memory_space<smem>>
    %204 = vector.broadcast %203 : f32 to vector<8x128xf32>
    %205 = arith.mulf %16, %204 : vector<8x128xf32>
    %206 = arith.addf %202, %205 : vector<8x128xf32>
    %cst_96 = arith.constant 0.000000e+00 : f32
    %207 = vector.broadcast %cst_96 : f32 to vector<8x128xf32>
    %208 = arith.maximumf %206, %207 : vector<8x128xf32>
    %c8 = arith.constant 8 : index
    %c0_97 = arith.constant 0 : index
    %209 = memref.load %arg1[%c8, %c0_97] : memref<10x5xf32, #tpu.memory_space<smem>>
    %210 = vector.broadcast %209 : f32 to vector<8x128xf32>
    %211 = arith.mulf %4, %210 : vector<8x128xf32>
    %c8_98 = arith.constant 8 : index
    %212 = memref.load %arg2[%c8_98] : memref<10xf32, #tpu.memory_space<smem>>
    %213 = vector.broadcast %212 : f32 to vector<8x128xf32>
    %214 = arith.addf %211, %213 : vector<8x128xf32>
    %c8_99 = arith.constant 8 : index
    %c1_100 = arith.constant 1 : index
    %215 = memref.load %arg1[%c8_99, %c1_100] : memref<10x5xf32, #tpu.memory_space<smem>>
    %216 = vector.broadcast %215 : f32 to vector<8x128xf32>
    %217 = arith.mulf %7, %216 : vector<8x128xf32>
    %218 = arith.addf %214, %217 : vector<8x128xf32>
    %c8_101 = arith.constant 8 : index
    %c2_102 = arith.constant 2 : index
    %219 = memref.load %arg1[%c8_101, %c2_102] : memref<10x5xf32, #tpu.memory_space<smem>>
    %220 = vector.broadcast %219 : f32 to vector<8x128xf32>
    %221 = arith.mulf %10, %220 : vector<8x128xf32>
    %222 = arith.addf %218, %221 : vector<8x128xf32>
    %c8_103 = arith.constant 8 : index
    %c3_104 = arith.constant 3 : index
    %223 = memref.load %arg1[%c8_103, %c3_104] : memref<10x5xf32, #tpu.memory_space<smem>>
    %224 = vector.broadcast %223 : f32 to vector<8x128xf32>
    %225 = arith.mulf %13, %224 : vector<8x128xf32>
    %226 = arith.addf %222, %225 : vector<8x128xf32>
    %c8_105 = arith.constant 8 : index
    %c4_106 = arith.constant 4 : index
    %227 = memref.load %arg1[%c8_105, %c4_106] : memref<10x5xf32, #tpu.memory_space<smem>>
    %228 = vector.broadcast %227 : f32 to vector<8x128xf32>
    %229 = arith.mulf %16, %228 : vector<8x128xf32>
    %230 = arith.addf %226, %229 : vector<8x128xf32>
    %cst_107 = arith.constant 0.000000e+00 : f32
    %231 = vector.broadcast %cst_107 : f32 to vector<8x128xf32>
    %232 = arith.maximumf %230, %231 : vector<8x128xf32>
    %c9 = arith.constant 9 : index
    %c0_108 = arith.constant 0 : index
    %233 = memref.load %arg1[%c9, %c0_108] : memref<10x5xf32, #tpu.memory_space<smem>>
    %234 = vector.broadcast %233 : f32 to vector<8x128xf32>
    %235 = arith.mulf %4, %234 : vector<8x128xf32>
    %c9_109 = arith.constant 9 : index
    %236 = memref.load %arg2[%c9_109] : memref<10xf32, #tpu.memory_space<smem>>
    %237 = vector.broadcast %236 : f32 to vector<8x128xf32>
    %238 = arith.addf %235, %237 : vector<8x128xf32>
    %c9_110 = arith.constant 9 : index
    %c1_111 = arith.constant 1 : index
    %239 = memref.load %arg1[%c9_110, %c1_111] : memref<10x5xf32, #tpu.memory_space<smem>>
    %240 = vector.broadcast %239 : f32 to vector<8x128xf32>
    %241 = arith.mulf %7, %240 : vector<8x128xf32>
    %242 = arith.addf %238, %241 : vector<8x128xf32>
    %c9_112 = arith.constant 9 : index
    %c2_113 = arith.constant 2 : index
    %243 = memref.load %arg1[%c9_112, %c2_113] : memref<10x5xf32, #tpu.memory_space<smem>>
    %244 = vector.broadcast %243 : f32 to vector<8x128xf32>
    %245 = arith.mulf %10, %244 : vector<8x128xf32>
    %246 = arith.addf %242, %245 : vector<8x128xf32>
    %c9_114 = arith.constant 9 : index
    %c3_115 = arith.constant 3 : index
    %247 = memref.load %arg1[%c9_114, %c3_115] : memref<10x5xf32, #tpu.memory_space<smem>>
    %248 = vector.broadcast %247 : f32 to vector<8x128xf32>
    %249 = arith.mulf %13, %248 : vector<8x128xf32>
    %250 = arith.addf %246, %249 : vector<8x128xf32>
    %c9_116 = arith.constant 9 : index
    %c4_117 = arith.constant 4 : index
    %251 = memref.load %arg1[%c9_116, %c4_117] : memref<10x5xf32, #tpu.memory_space<smem>>
    %252 = vector.broadcast %251 : f32 to vector<8x128xf32>
    %253 = arith.mulf %16, %252 : vector<8x128xf32>
    %254 = arith.addf %250, %253 : vector<8x128xf32>
    %cst_118 = arith.constant 0.000000e+00 : f32
    %255 = vector.broadcast %cst_118 : f32 to vector<8x128xf32>
    %256 = arith.maximumf %254, %255 : vector<8x128xf32>
    %c0_119 = arith.constant 0 : index
    %c0_120 = arith.constant 0 : index
    %257 = memref.load %arg3[%c0_119, %c0_120] : memref<10x10xf32, #tpu.memory_space<smem>>
    %258 = vector.broadcast %257 : f32 to vector<8x128xf32>
    %259 = arith.mulf %40, %258 : vector<8x128xf32>
    %c0_121 = arith.constant 0 : index
    %260 = memref.load %arg4[%c0_121] : memref<10xf32, #tpu.memory_space<smem>>
    %261 = vector.broadcast %260 : f32 to vector<8x128xf32>
    %262 = arith.addf %259, %261 : vector<8x128xf32>
    %c0_122 = arith.constant 0 : index
    %c1_123 = arith.constant 1 : index
    %263 = memref.load %arg3[%c0_122, %c1_123] : memref<10x10xf32, #tpu.memory_space<smem>>
    %264 = vector.broadcast %263 : f32 to vector<8x128xf32>
    %265 = arith.mulf %64, %264 : vector<8x128xf32>
    %266 = arith.addf %262, %265 : vector<8x128xf32>
    %c0_124 = arith.constant 0 : index
    %c2_125 = arith.constant 2 : index
    %267 = memref.load %arg3[%c0_124, %c2_125] : memref<10x10xf32, #tpu.memory_space<smem>>
    %268 = vector.broadcast %267 : f32 to vector<8x128xf32>
    %269 = arith.mulf %88, %268 : vector<8x128xf32>
    %270 = arith.addf %266, %269 : vector<8x128xf32>
    %c0_126 = arith.constant 0 : index
    %c3_127 = arith.constant 3 : index
    %271 = memref.load %arg3[%c0_126, %c3_127] : memref<10x10xf32, #tpu.memory_space<smem>>
    %272 = vector.broadcast %271 : f32 to vector<8x128xf32>
    %273 = arith.mulf %112, %272 : vector<8x128xf32>
    %274 = arith.addf %270, %273 : vector<8x128xf32>
    %c0_128 = arith.constant 0 : index
    %c4_129 = arith.constant 4 : index
    %275 = memref.load %arg3[%c0_128, %c4_129] : memref<10x10xf32, #tpu.memory_space<smem>>
    %276 = vector.broadcast %275 : f32 to vector<8x128xf32>
    %277 = arith.mulf %136, %276 : vector<8x128xf32>
    %278 = arith.addf %274, %277 : vector<8x128xf32>
    %c0_130 = arith.constant 0 : index
    %c5_131 = arith.constant 5 : index
    %279 = memref.load %arg3[%c0_130, %c5_131] : memref<10x10xf32, #tpu.memory_space<smem>>
    %280 = vector.broadcast %279 : f32 to vector<8x128xf32>
    %281 = arith.mulf %160, %280 : vector<8x128xf32>
    %282 = arith.addf %278, %281 : vector<8x128xf32>
    %c0_132 = arith.constant 0 : index
    %c6_133 = arith.constant 6 : index
    %283 = memref.load %arg3[%c0_132, %c6_133] : memref<10x10xf32, #tpu.memory_space<smem>>
    %284 = vector.broadcast %283 : f32 to vector<8x128xf32>
    %285 = arith.mulf %184, %284 : vector<8x128xf32>
    %286 = arith.addf %282, %285 : vector<8x128xf32>
    %c0_134 = arith.constant 0 : index
    %c7_135 = arith.constant 7 : index
    %287 = memref.load %arg3[%c0_134, %c7_135] : memref<10x10xf32, #tpu.memory_space<smem>>
    %288 = vector.broadcast %287 : f32 to vector<8x128xf32>
    %289 = arith.mulf %208, %288 : vector<8x128xf32>
    %290 = arith.addf %286, %289 : vector<8x128xf32>
    %c0_136 = arith.constant 0 : index
    %c8_137 = arith.constant 8 : index
    %291 = memref.load %arg3[%c0_136, %c8_137] : memref<10x10xf32, #tpu.memory_space<smem>>
    %292 = vector.broadcast %291 : f32 to vector<8x128xf32>
    %293 = arith.mulf %232, %292 : vector<8x128xf32>
    %294 = arith.addf %290, %293 : vector<8x128xf32>
    %c0_138 = arith.constant 0 : index
    %c9_139 = arith.constant 9 : index
    %295 = memref.load %arg3[%c0_138, %c9_139] : memref<10x10xf32, #tpu.memory_space<smem>>
    %296 = vector.broadcast %295 : f32 to vector<8x128xf32>
    %297 = arith.mulf %256, %296 : vector<8x128xf32>
    %298 = arith.addf %294, %297 : vector<8x128xf32>
    %cst_140 = arith.constant 0.000000e+00 : f32
    %299 = vector.broadcast %cst_140 : f32 to vector<8x128xf32>
    %300 = arith.maximumf %298, %299 : vector<8x128xf32>
    %c1_141 = arith.constant 1 : index
    %c0_142 = arith.constant 0 : index
    %301 = memref.load %arg3[%c1_141, %c0_142] : memref<10x10xf32, #tpu.memory_space<smem>>
    %302 = vector.broadcast %301 : f32 to vector<8x128xf32>
    %303 = arith.mulf %40, %302 : vector<8x128xf32>
    %c1_143 = arith.constant 1 : index
    %304 = memref.load %arg4[%c1_143] : memref<10xf32, #tpu.memory_space<smem>>
    %305 = vector.broadcast %304 : f32 to vector<8x128xf32>
    %306 = arith.addf %303, %305 : vector<8x128xf32>
    %c1_144 = arith.constant 1 : index
    %c1_145 = arith.constant 1 : index
    %307 = memref.load %arg3[%c1_144, %c1_145] : memref<10x10xf32, #tpu.memory_space<smem>>
    %308 = vector.broadcast %307 : f32 to vector<8x128xf32>
    %309 = arith.mulf %64, %308 : vector<8x128xf32>
    %310 = arith.addf %306, %309 : vector<8x128xf32>
    %c1_146 = arith.constant 1 : index
    %c2_147 = arith.constant 2 : index
    %311 = memref.load %arg3[%c1_146, %c2_147] : memref<10x10xf32, #tpu.memory_space<smem>>
    %312 = vector.broadcast %311 : f32 to vector<8x128xf32>
    %313 = arith.mulf %88, %312 : vector<8x128xf32>
    %314 = arith.addf %310, %313 : vector<8x128xf32>
    %c1_148 = arith.constant 1 : index
    %c3_149 = arith.constant 3 : index
    %315 = memref.load %arg3[%c1_148, %c3_149] : memref<10x10xf32, #tpu.memory_space<smem>>
    %316 = vector.broadcast %315 : f32 to vector<8x128xf32>
    %317 = arith.mulf %112, %316 : vector<8x128xf32>
    %318 = arith.addf %314, %317 : vector<8x128xf32>
    %c1_150 = arith.constant 1 : index
    %c4_151 = arith.constant 4 : index
    %319 = memref.load %arg3[%c1_150, %c4_151] : memref<10x10xf32, #tpu.memory_space<smem>>
    %320 = vector.broadcast %319 : f32 to vector<8x128xf32>
    %321 = arith.mulf %136, %320 : vector<8x128xf32>
    %322 = arith.addf %318, %321 : vector<8x128xf32>
    %c1_152 = arith.constant 1 : index
    %c5_153 = arith.constant 5 : index
    %323 = memref.load %arg3[%c1_152, %c5_153] : memref<10x10xf32, #tpu.memory_space<smem>>
    %324 = vector.broadcast %323 : f32 to vector<8x128xf32>
    %325 = arith.mulf %160, %324 : vector<8x128xf32>
    %326 = arith.addf %322, %325 : vector<8x128xf32>
    %c1_154 = arith.constant 1 : index
    %c6_155 = arith.constant 6 : index
    %327 = memref.load %arg3[%c1_154, %c6_155] : memref<10x10xf32, #tpu.memory_space<smem>>
    %328 = vector.broadcast %327 : f32 to vector<8x128xf32>
    %329 = arith.mulf %184, %328 : vector<8x128xf32>
    %330 = arith.addf %326, %329 : vector<8x128xf32>
    %c1_156 = arith.constant 1 : index
    %c7_157 = arith.constant 7 : index
    %331 = memref.load %arg3[%c1_156, %c7_157] : memref<10x10xf32, #tpu.memory_space<smem>>
    %332 = vector.broadcast %331 : f32 to vector<8x128xf32>
    %333 = arith.mulf %208, %332 : vector<8x128xf32>
    %334 = arith.addf %330, %333 : vector<8x128xf32>
    %c1_158 = arith.constant 1 : index
    %c8_159 = arith.constant 8 : index
    %335 = memref.load %arg3[%c1_158, %c8_159] : memref<10x10xf32, #tpu.memory_space<smem>>
    %336 = vector.broadcast %335 : f32 to vector<8x128xf32>
    %337 = arith.mulf %232, %336 : vector<8x128xf32>
    %338 = arith.addf %334, %337 : vector<8x128xf32>
    %c1_160 = arith.constant 1 : index
    %c9_161 = arith.constant 9 : index
    %339 = memref.load %arg3[%c1_160, %c9_161] : memref<10x10xf32, #tpu.memory_space<smem>>
    %340 = vector.broadcast %339 : f32 to vector<8x128xf32>
    %341 = arith.mulf %256, %340 : vector<8x128xf32>
    %342 = arith.addf %338, %341 : vector<8x128xf32>
    %cst_162 = arith.constant 0.000000e+00 : f32
    %343 = vector.broadcast %cst_162 : f32 to vector<8x128xf32>
    %344 = arith.maximumf %342, %343 : vector<8x128xf32>
    %c2_163 = arith.constant 2 : index
    %c0_164 = arith.constant 0 : index
    %345 = memref.load %arg3[%c2_163, %c0_164] : memref<10x10xf32, #tpu.memory_space<smem>>
    %346 = vector.broadcast %345 : f32 to vector<8x128xf32>
    %347 = arith.mulf %40, %346 : vector<8x128xf32>
    %c2_165 = arith.constant 2 : index
    %348 = memref.load %arg4[%c2_165] : memref<10xf32, #tpu.memory_space<smem>>
    %349 = vector.broadcast %348 : f32 to vector<8x128xf32>
    %350 = arith.addf %347, %349 : vector<8x128xf32>
    %c2_166 = arith.constant 2 : index
    %c1_167 = arith.constant 1 : index
    %351 = memref.load %arg3[%c2_166, %c1_167] : memref<10x10xf32, #tpu.memory_space<smem>>
    %352 = vector.broadcast %351 : f32 to vector<8x128xf32>
    %353 = arith.mulf %64, %352 : vector<8x128xf32>
    %354 = arith.addf %350, %353 : vector<8x128xf32>
    %c2_168 = arith.constant 2 : index
    %c2_169 = arith.constant 2 : index
    %355 = memref.load %arg3[%c2_168, %c2_169] : memref<10x10xf32, #tpu.memory_space<smem>>
    %356 = vector.broadcast %355 : f32 to vector<8x128xf32>
    %357 = arith.mulf %88, %356 : vector<8x128xf32>
    %358 = arith.addf %354, %357 : vector<8x128xf32>
    %c2_170 = arith.constant 2 : index
    %c3_171 = arith.constant 3 : index
    %359 = memref.load %arg3[%c2_170, %c3_171] : memref<10x10xf32, #tpu.memory_space<smem>>
    %360 = vector.broadcast %359 : f32 to vector<8x128xf32>
    %361 = arith.mulf %112, %360 : vector<8x128xf32>
    %362 = arith.addf %358, %361 : vector<8x128xf32>
    %c2_172 = arith.constant 2 : index
    %c4_173 = arith.constant 4 : index
    %363 = memref.load %arg3[%c2_172, %c4_173] : memref<10x10xf32, #tpu.memory_space<smem>>
    %364 = vector.broadcast %363 : f32 to vector<8x128xf32>
    %365 = arith.mulf %136, %364 : vector<8x128xf32>
    %366 = arith.addf %362, %365 : vector<8x128xf32>
    %c2_174 = arith.constant 2 : index
    %c5_175 = arith.constant 5 : index
    %367 = memref.load %arg3[%c2_174, %c5_175] : memref<10x10xf32, #tpu.memory_space<smem>>
    %368 = vector.broadcast %367 : f32 to vector<8x128xf32>
    %369 = arith.mulf %160, %368 : vector<8x128xf32>
    %370 = arith.addf %366, %369 : vector<8x128xf32>
    %c2_176 = arith.constant 2 : index
    %c6_177 = arith.constant 6 : index
    %371 = memref.load %arg3[%c2_176, %c6_177] : memref<10x10xf32, #tpu.memory_space<smem>>
    %372 = vector.broadcast %371 : f32 to vector<8x128xf32>
    %373 = arith.mulf %184, %372 : vector<8x128xf32>
    %374 = arith.addf %370, %373 : vector<8x128xf32>
    %c2_178 = arith.constant 2 : index
    %c7_179 = arith.constant 7 : index
    %375 = memref.load %arg3[%c2_178, %c7_179] : memref<10x10xf32, #tpu.memory_space<smem>>
    %376 = vector.broadcast %375 : f32 to vector<8x128xf32>
    %377 = arith.mulf %208, %376 : vector<8x128xf32>
    %378 = arith.addf %374, %377 : vector<8x128xf32>
    %c2_180 = arith.constant 2 : index
    %c8_181 = arith.constant 8 : index
    %379 = memref.load %arg3[%c2_180, %c8_181] : memref<10x10xf32, #tpu.memory_space<smem>>
    %380 = vector.broadcast %379 : f32 to vector<8x128xf32>
    %381 = arith.mulf %232, %380 : vector<8x128xf32>
    %382 = arith.addf %378, %381 : vector<8x128xf32>
    %c2_182 = arith.constant 2 : index
    %c9_183 = arith.constant 9 : index
    %383 = memref.load %arg3[%c2_182, %c9_183] : memref<10x10xf32, #tpu.memory_space<smem>>
    %384 = vector.broadcast %383 : f32 to vector<8x128xf32>
    %385 = arith.mulf %256, %384 : vector<8x128xf32>
    %386 = arith.addf %382, %385 : vector<8x128xf32>
    %cst_184 = arith.constant 0.000000e+00 : f32
    %387 = vector.broadcast %cst_184 : f32 to vector<8x128xf32>
    %388 = arith.maximumf %386, %387 : vector<8x128xf32>
    %c3_185 = arith.constant 3 : index
    %c0_186 = arith.constant 0 : index
    %389 = memref.load %arg3[%c3_185, %c0_186] : memref<10x10xf32, #tpu.memory_space<smem>>
    %390 = vector.broadcast %389 : f32 to vector<8x128xf32>
    %391 = arith.mulf %40, %390 : vector<8x128xf32>
    %c3_187 = arith.constant 3 : index
    %392 = memref.load %arg4[%c3_187] : memref<10xf32, #tpu.memory_space<smem>>
    %393 = vector.broadcast %392 : f32 to vector<8x128xf32>
    %394 = arith.addf %391, %393 : vector<8x128xf32>
    %c3_188 = arith.constant 3 : index
    %c1_189 = arith.constant 1 : index
    %395 = memref.load %arg3[%c3_188, %c1_189] : memref<10x10xf32, #tpu.memory_space<smem>>
    %396 = vector.broadcast %395 : f32 to vector<8x128xf32>
    %397 = arith.mulf %64, %396 : vector<8x128xf32>
    %398 = arith.addf %394, %397 : vector<8x128xf32>
    %c3_190 = arith.constant 3 : index
    %c2_191 = arith.constant 2 : index
    %399 = memref.load %arg3[%c3_190, %c2_191] : memref<10x10xf32, #tpu.memory_space<smem>>
    %400 = vector.broadcast %399 : f32 to vector<8x128xf32>
    %401 = arith.mulf %88, %400 : vector<8x128xf32>
    %402 = arith.addf %398, %401 : vector<8x128xf32>
    %c3_192 = arith.constant 3 : index
    %c3_193 = arith.constant 3 : index
    %403 = memref.load %arg3[%c3_192, %c3_193] : memref<10x10xf32, #tpu.memory_space<smem>>
    %404 = vector.broadcast %403 : f32 to vector<8x128xf32>
    %405 = arith.mulf %112, %404 : vector<8x128xf32>
    %406 = arith.addf %402, %405 : vector<8x128xf32>
    %c3_194 = arith.constant 3 : index
    %c4_195 = arith.constant 4 : index
    %407 = memref.load %arg3[%c3_194, %c4_195] : memref<10x10xf32, #tpu.memory_space<smem>>
    %408 = vector.broadcast %407 : f32 to vector<8x128xf32>
    %409 = arith.mulf %136, %408 : vector<8x128xf32>
    %410 = arith.addf %406, %409 : vector<8x128xf32>
    %c3_196 = arith.constant 3 : index
    %c5_197 = arith.constant 5 : index
    %411 = memref.load %arg3[%c3_196, %c5_197] : memref<10x10xf32, #tpu.memory_space<smem>>
    %412 = vector.broadcast %411 : f32 to vector<8x128xf32>
    %413 = arith.mulf %160, %412 : vector<8x128xf32>
    %414 = arith.addf %410, %413 : vector<8x128xf32>
    %c3_198 = arith.constant 3 : index
    %c6_199 = arith.constant 6 : index
    %415 = memref.load %arg3[%c3_198, %c6_199] : memref<10x10xf32, #tpu.memory_space<smem>>
    %416 = vector.broadcast %415 : f32 to vector<8x128xf32>
    %417 = arith.mulf %184, %416 : vector<8x128xf32>
    %418 = arith.addf %414, %417 : vector<8x128xf32>
    %c3_200 = arith.constant 3 : index
    %c7_201 = arith.constant 7 : index
    %419 = memref.load %arg3[%c3_200, %c7_201] : memref<10x10xf32, #tpu.memory_space<smem>>
    %420 = vector.broadcast %419 : f32 to vector<8x128xf32>
    %421 = arith.mulf %208, %420 : vector<8x128xf32>
    %422 = arith.addf %418, %421 : vector<8x128xf32>
    %c3_202 = arith.constant 3 : index
    %c8_203 = arith.constant 8 : index
    %423 = memref.load %arg3[%c3_202, %c8_203] : memref<10x10xf32, #tpu.memory_space<smem>>
    %424 = vector.broadcast %423 : f32 to vector<8x128xf32>
    %425 = arith.mulf %232, %424 : vector<8x128xf32>
    %426 = arith.addf %422, %425 : vector<8x128xf32>
    %c3_204 = arith.constant 3 : index
    %c9_205 = arith.constant 9 : index
    %427 = memref.load %arg3[%c3_204, %c9_205] : memref<10x10xf32, #tpu.memory_space<smem>>
    %428 = vector.broadcast %427 : f32 to vector<8x128xf32>
    %429 = arith.mulf %256, %428 : vector<8x128xf32>
    %430 = arith.addf %426, %429 : vector<8x128xf32>
    %cst_206 = arith.constant 0.000000e+00 : f32
    %431 = vector.broadcast %cst_206 : f32 to vector<8x128xf32>
    %432 = arith.maximumf %430, %431 : vector<8x128xf32>
    %c4_207 = arith.constant 4 : index
    %c0_208 = arith.constant 0 : index
    %433 = memref.load %arg3[%c4_207, %c0_208] : memref<10x10xf32, #tpu.memory_space<smem>>
    %434 = vector.broadcast %433 : f32 to vector<8x128xf32>
    %435 = arith.mulf %40, %434 : vector<8x128xf32>
    %c4_209 = arith.constant 4 : index
    %436 = memref.load %arg4[%c4_209] : memref<10xf32, #tpu.memory_space<smem>>
    %437 = vector.broadcast %436 : f32 to vector<8x128xf32>
    %438 = arith.addf %435, %437 : vector<8x128xf32>
    %c4_210 = arith.constant 4 : index
    %c1_211 = arith.constant 1 : index
    %439 = memref.load %arg3[%c4_210, %c1_211] : memref<10x10xf32, #tpu.memory_space<smem>>
    %440 = vector.broadcast %439 : f32 to vector<8x128xf32>
    %441 = arith.mulf %64, %440 : vector<8x128xf32>
    %442 = arith.addf %438, %441 : vector<8x128xf32>
    %c4_212 = arith.constant 4 : index
    %c2_213 = arith.constant 2 : index
    %443 = memref.load %arg3[%c4_212, %c2_213] : memref<10x10xf32, #tpu.memory_space<smem>>
    %444 = vector.broadcast %443 : f32 to vector<8x128xf32>
    %445 = arith.mulf %88, %444 : vector<8x128xf32>
    %446 = arith.addf %442, %445 : vector<8x128xf32>
    %c4_214 = arith.constant 4 : index
    %c3_215 = arith.constant 3 : index
    %447 = memref.load %arg3[%c4_214, %c3_215] : memref<10x10xf32, #tpu.memory_space<smem>>
    %448 = vector.broadcast %447 : f32 to vector<8x128xf32>
    %449 = arith.mulf %112, %448 : vector<8x128xf32>
    %450 = arith.addf %446, %449 : vector<8x128xf32>
    %c4_216 = arith.constant 4 : index
    %c4_217 = arith.constant 4 : index
    %451 = memref.load %arg3[%c4_216, %c4_217] : memref<10x10xf32, #tpu.memory_space<smem>>
    %452 = vector.broadcast %451 : f32 to vector<8x128xf32>
    %453 = arith.mulf %136, %452 : vector<8x128xf32>
    %454 = arith.addf %450, %453 : vector<8x128xf32>
    %c4_218 = arith.constant 4 : index
    %c5_219 = arith.constant 5 : index
    %455 = memref.load %arg3[%c4_218, %c5_219] : memref<10x10xf32, #tpu.memory_space<smem>>
    %456 = vector.broadcast %455 : f32 to vector<8x128xf32>
    %457 = arith.mulf %160, %456 : vector<8x128xf32>
    %458 = arith.addf %454, %457 : vector<8x128xf32>
    %c4_220 = arith.constant 4 : index
    %c6_221 = arith.constant 6 : index
    %459 = memref.load %arg3[%c4_220, %c6_221] : memref<10x10xf32, #tpu.memory_space<smem>>
    %460 = vector.broadcast %459 : f32 to vector<8x128xf32>
    %461 = arith.mulf %184, %460 : vector<8x128xf32>
    %462 = arith.addf %458, %461 : vector<8x128xf32>
    %c4_222 = arith.constant 4 : index
    %c7_223 = arith.constant 7 : index
    %463 = memref.load %arg3[%c4_222, %c7_223] : memref<10x10xf32, #tpu.memory_space<smem>>
    %464 = vector.broadcast %463 : f32 to vector<8x128xf32>
    %465 = arith.mulf %208, %464 : vector<8x128xf32>
    %466 = arith.addf %462, %465 : vector<8x128xf32>
    %c4_224 = arith.constant 4 : index
    %c8_225 = arith.constant 8 : index
    %467 = memref.load %arg3[%c4_224, %c8_225] : memref<10x10xf32, #tpu.memory_space<smem>>
    %468 = vector.broadcast %467 : f32 to vector<8x128xf32>
    %469 = arith.mulf %232, %468 : vector<8x128xf32>
    %470 = arith.addf %466, %469 : vector<8x128xf32>
    %c4_226 = arith.constant 4 : index
    %c9_227 = arith.constant 9 : index
    %471 = memref.load %arg3[%c4_226, %c9_227] : memref<10x10xf32, #tpu.memory_space<smem>>
    %472 = vector.broadcast %471 : f32 to vector<8x128xf32>
    %473 = arith.mulf %256, %472 : vector<8x128xf32>
    %474 = arith.addf %470, %473 : vector<8x128xf32>
    %cst_228 = arith.constant 0.000000e+00 : f32
    %475 = vector.broadcast %cst_228 : f32 to vector<8x128xf32>
    %476 = arith.maximumf %474, %475 : vector<8x128xf32>
    %c5_229 = arith.constant 5 : index
    %c0_230 = arith.constant 0 : index
    %477 = memref.load %arg3[%c5_229, %c0_230] : memref<10x10xf32, #tpu.memory_space<smem>>
    %478 = vector.broadcast %477 : f32 to vector<8x128xf32>
    %479 = arith.mulf %40, %478 : vector<8x128xf32>
    %c5_231 = arith.constant 5 : index
    %480 = memref.load %arg4[%c5_231] : memref<10xf32, #tpu.memory_space<smem>>
    %481 = vector.broadcast %480 : f32 to vector<8x128xf32>
    %482 = arith.addf %479, %481 : vector<8x128xf32>
    %c5_232 = arith.constant 5 : index
    %c1_233 = arith.constant 1 : index
    %483 = memref.load %arg3[%c5_232, %c1_233] : memref<10x10xf32, #tpu.memory_space<smem>>
    %484 = vector.broadcast %483 : f32 to vector<8x128xf32>
    %485 = arith.mulf %64, %484 : vector<8x128xf32>
    %486 = arith.addf %482, %485 : vector<8x128xf32>
    %c5_234 = arith.constant 5 : index
    %c2_235 = arith.constant 2 : index
    %487 = memref.load %arg3[%c5_234, %c2_235] : memref<10x10xf32, #tpu.memory_space<smem>>
    %488 = vector.broadcast %487 : f32 to vector<8x128xf32>
    %489 = arith.mulf %88, %488 : vector<8x128xf32>
    %490 = arith.addf %486, %489 : vector<8x128xf32>
    %c5_236 = arith.constant 5 : index
    %c3_237 = arith.constant 3 : index
    %491 = memref.load %arg3[%c5_236, %c3_237] : memref<10x10xf32, #tpu.memory_space<smem>>
    %492 = vector.broadcast %491 : f32 to vector<8x128xf32>
    %493 = arith.mulf %112, %492 : vector<8x128xf32>
    %494 = arith.addf %490, %493 : vector<8x128xf32>
    %c5_238 = arith.constant 5 : index
    %c4_239 = arith.constant 4 : index
    %495 = memref.load %arg3[%c5_238, %c4_239] : memref<10x10xf32, #tpu.memory_space<smem>>
    %496 = vector.broadcast %495 : f32 to vector<8x128xf32>
    %497 = arith.mulf %136, %496 : vector<8x128xf32>
    %498 = arith.addf %494, %497 : vector<8x128xf32>
    %c5_240 = arith.constant 5 : index
    %c5_241 = arith.constant 5 : index
    %499 = memref.load %arg3[%c5_240, %c5_241] : memref<10x10xf32, #tpu.memory_space<smem>>
    %500 = vector.broadcast %499 : f32 to vector<8x128xf32>
    %501 = arith.mulf %160, %500 : vector<8x128xf32>
    %502 = arith.addf %498, %501 : vector<8x128xf32>
    %c5_242 = arith.constant 5 : index
    %c6_243 = arith.constant 6 : index
    %503 = memref.load %arg3[%c5_242, %c6_243] : memref<10x10xf32, #tpu.memory_space<smem>>
    %504 = vector.broadcast %503 : f32 to vector<8x128xf32>
    %505 = arith.mulf %184, %504 : vector<8x128xf32>
    %506 = arith.addf %502, %505 : vector<8x128xf32>
    %c5_244 = arith.constant 5 : index
    %c7_245 = arith.constant 7 : index
    %507 = memref.load %arg3[%c5_244, %c7_245] : memref<10x10xf32, #tpu.memory_space<smem>>
    %508 = vector.broadcast %507 : f32 to vector<8x128xf32>
    %509 = arith.mulf %208, %508 : vector<8x128xf32>
    %510 = arith.addf %506, %509 : vector<8x128xf32>
    %c5_246 = arith.constant 5 : index
    %c8_247 = arith.constant 8 : index
    %511 = memref.load %arg3[%c5_246, %c8_247] : memref<10x10xf32, #tpu.memory_space<smem>>
    %512 = vector.broadcast %511 : f32 to vector<8x128xf32>
    %513 = arith.mulf %232, %512 : vector<8x128xf32>
    %514 = arith.addf %510, %513 : vector<8x128xf32>
    %c5_248 = arith.constant 5 : index
    %c9_249 = arith.constant 9 : index
    %515 = memref.load %arg3[%c5_248, %c9_249] : memref<10x10xf32, #tpu.memory_space<smem>>
    %516 = vector.broadcast %515 : f32 to vector<8x128xf32>
    %517 = arith.mulf %256, %516 : vector<8x128xf32>
    %518 = arith.addf %514, %517 : vector<8x128xf32>
    %cst_250 = arith.constant 0.000000e+00 : f32
    %519 = vector.broadcast %cst_250 : f32 to vector<8x128xf32>
    %520 = arith.maximumf %518, %519 : vector<8x128xf32>
    %c6_251 = arith.constant 6 : index
    %c0_252 = arith.constant 0 : index
    %521 = memref.load %arg3[%c6_251, %c0_252] : memref<10x10xf32, #tpu.memory_space<smem>>
    %522 = vector.broadcast %521 : f32 to vector<8x128xf32>
    %523 = arith.mulf %40, %522 : vector<8x128xf32>
    %c6_253 = arith.constant 6 : index
    %524 = memref.load %arg4[%c6_253] : memref<10xf32, #tpu.memory_space<smem>>
    %525 = vector.broadcast %524 : f32 to vector<8x128xf32>
    %526 = arith.addf %523, %525 : vector<8x128xf32>
    %c6_254 = arith.constant 6 : index
    %c1_255 = arith.constant 1 : index
    %527 = memref.load %arg3[%c6_254, %c1_255] : memref<10x10xf32, #tpu.memory_space<smem>>
    %528 = vector.broadcast %527 : f32 to vector<8x128xf32>
    %529 = arith.mulf %64, %528 : vector<8x128xf32>
    %530 = arith.addf %526, %529 : vector<8x128xf32>
    %c6_256 = arith.constant 6 : index
    %c2_257 = arith.constant 2 : index
    %531 = memref.load %arg3[%c6_256, %c2_257] : memref<10x10xf32, #tpu.memory_space<smem>>
    %532 = vector.broadcast %531 : f32 to vector<8x128xf32>
    %533 = arith.mulf %88, %532 : vector<8x128xf32>
    %534 = arith.addf %530, %533 : vector<8x128xf32>
    %c6_258 = arith.constant 6 : index
    %c3_259 = arith.constant 3 : index
    %535 = memref.load %arg3[%c6_258, %c3_259] : memref<10x10xf32, #tpu.memory_space<smem>>
    %536 = vector.broadcast %535 : f32 to vector<8x128xf32>
    %537 = arith.mulf %112, %536 : vector<8x128xf32>
    %538 = arith.addf %534, %537 : vector<8x128xf32>
    %c6_260 = arith.constant 6 : index
    %c4_261 = arith.constant 4 : index
    %539 = memref.load %arg3[%c6_260, %c4_261] : memref<10x10xf32, #tpu.memory_space<smem>>
    %540 = vector.broadcast %539 : f32 to vector<8x128xf32>
    %541 = arith.mulf %136, %540 : vector<8x128xf32>
    %542 = arith.addf %538, %541 : vector<8x128xf32>
    %c6_262 = arith.constant 6 : index
    %c5_263 = arith.constant 5 : index
    %543 = memref.load %arg3[%c6_262, %c5_263] : memref<10x10xf32, #tpu.memory_space<smem>>
    %544 = vector.broadcast %543 : f32 to vector<8x128xf32>
    %545 = arith.mulf %160, %544 : vector<8x128xf32>
    %546 = arith.addf %542, %545 : vector<8x128xf32>
    %c6_264 = arith.constant 6 : index
    %c6_265 = arith.constant 6 : index
    %547 = memref.load %arg3[%c6_264, %c6_265] : memref<10x10xf32, #tpu.memory_space<smem>>
    %548 = vector.broadcast %547 : f32 to vector<8x128xf32>
    %549 = arith.mulf %184, %548 : vector<8x128xf32>
    %550 = arith.addf %546, %549 : vector<8x128xf32>
    %c6_266 = arith.constant 6 : index
    %c7_267 = arith.constant 7 : index
    %551 = memref.load %arg3[%c6_266, %c7_267] : memref<10x10xf32, #tpu.memory_space<smem>>
    %552 = vector.broadcast %551 : f32 to vector<8x128xf32>
    %553 = arith.mulf %208, %552 : vector<8x128xf32>
    %554 = arith.addf %550, %553 : vector<8x128xf32>
    %c6_268 = arith.constant 6 : index
    %c8_269 = arith.constant 8 : index
    %555 = memref.load %arg3[%c6_268, %c8_269] : memref<10x10xf32, #tpu.memory_space<smem>>
    %556 = vector.broadcast %555 : f32 to vector<8x128xf32>
    %557 = arith.mulf %232, %556 : vector<8x128xf32>
    %558 = arith.addf %554, %557 : vector<8x128xf32>
    %c6_270 = arith.constant 6 : index
    %c9_271 = arith.constant 9 : index
    %559 = memref.load %arg3[%c6_270, %c9_271] : memref<10x10xf32, #tpu.memory_space<smem>>
    %560 = vector.broadcast %559 : f32 to vector<8x128xf32>
    %561 = arith.mulf %256, %560 : vector<8x128xf32>
    %562 = arith.addf %558, %561 : vector<8x128xf32>
    %cst_272 = arith.constant 0.000000e+00 : f32
    %563 = vector.broadcast %cst_272 : f32 to vector<8x128xf32>
    %564 = arith.maximumf %562, %563 : vector<8x128xf32>
    %c7_273 = arith.constant 7 : index
    %c0_274 = arith.constant 0 : index
    %565 = memref.load %arg3[%c7_273, %c0_274] : memref<10x10xf32, #tpu.memory_space<smem>>
    %566 = vector.broadcast %565 : f32 to vector<8x128xf32>
    %567 = arith.mulf %40, %566 : vector<8x128xf32>
    %c7_275 = arith.constant 7 : index
    %568 = memref.load %arg4[%c7_275] : memref<10xf32, #tpu.memory_space<smem>>
    %569 = vector.broadcast %568 : f32 to vector<8x128xf32>
    %570 = arith.addf %567, %569 : vector<8x128xf32>
    %c7_276 = arith.constant 7 : index
    %c1_277 = arith.constant 1 : index
    %571 = memref.load %arg3[%c7_276, %c1_277] : memref<10x10xf32, #tpu.memory_space<smem>>
    %572 = vector.broadcast %571 : f32 to vector<8x128xf32>
    %573 = arith.mulf %64, %572 : vector<8x128xf32>
    %574 = arith.addf %570, %573 : vector<8x128xf32>
    %c7_278 = arith.constant 7 : index
    %c2_279 = arith.constant 2 : index
    %575 = memref.load %arg3[%c7_278, %c2_279] : memref<10x10xf32, #tpu.memory_space<smem>>
    %576 = vector.broadcast %575 : f32 to vector<8x128xf32>
    %577 = arith.mulf %88, %576 : vector<8x128xf32>
    %578 = arith.addf %574, %577 : vector<8x128xf32>
    %c7_280 = arith.constant 7 : index
    %c3_281 = arith.constant 3 : index
    %579 = memref.load %arg3[%c7_280, %c3_281] : memref<10x10xf32, #tpu.memory_space<smem>>
    %580 = vector.broadcast %579 : f32 to vector<8x128xf32>
    %581 = arith.mulf %112, %580 : vector<8x128xf32>
    %582 = arith.addf %578, %581 : vector<8x128xf32>
    %c7_282 = arith.constant 7 : index
    %c4_283 = arith.constant 4 : index
    %583 = memref.load %arg3[%c7_282, %c4_283] : memref<10x10xf32, #tpu.memory_space<smem>>
    %584 = vector.broadcast %583 : f32 to vector<8x128xf32>
    %585 = arith.mulf %136, %584 : vector<8x128xf32>
    %586 = arith.addf %582, %585 : vector<8x128xf32>
    %c7_284 = arith.constant 7 : index
    %c5_285 = arith.constant 5 : index
    %587 = memref.load %arg3[%c7_284, %c5_285] : memref<10x10xf32, #tpu.memory_space<smem>>
    %588 = vector.broadcast %587 : f32 to vector<8x128xf32>
    %589 = arith.mulf %160, %588 : vector<8x128xf32>
    %590 = arith.addf %586, %589 : vector<8x128xf32>
    %c7_286 = arith.constant 7 : index
    %c6_287 = arith.constant 6 : index
    %591 = memref.load %arg3[%c7_286, %c6_287] : memref<10x10xf32, #tpu.memory_space<smem>>
    %592 = vector.broadcast %591 : f32 to vector<8x128xf32>
    %593 = arith.mulf %184, %592 : vector<8x128xf32>
    %594 = arith.addf %590, %593 : vector<8x128xf32>
    %c7_288 = arith.constant 7 : index
    %c7_289 = arith.constant 7 : index
    %595 = memref.load %arg3[%c7_288, %c7_289] : memref<10x10xf32, #tpu.memory_space<smem>>
    %596 = vector.broadcast %595 : f32 to vector<8x128xf32>
    %597 = arith.mulf %208, %596 : vector<8x128xf32>
    %598 = arith.addf %594, %597 : vector<8x128xf32>
    %c7_290 = arith.constant 7 : index
    %c8_291 = arith.constant 8 : index
    %599 = memref.load %arg3[%c7_290, %c8_291] : memref<10x10xf32, #tpu.memory_space<smem>>
    %600 = vector.broadcast %599 : f32 to vector<8x128xf32>
    %601 = arith.mulf %232, %600 : vector<8x128xf32>
    %602 = arith.addf %598, %601 : vector<8x128xf32>
    %c7_292 = arith.constant 7 : index
    %c9_293 = arith.constant 9 : index
    %603 = memref.load %arg3[%c7_292, %c9_293] : memref<10x10xf32, #tpu.memory_space<smem>>
    %604 = vector.broadcast %603 : f32 to vector<8x128xf32>
    %605 = arith.mulf %256, %604 : vector<8x128xf32>
    %606 = arith.addf %602, %605 : vector<8x128xf32>
    %cst_294 = arith.constant 0.000000e+00 : f32
    %607 = vector.broadcast %cst_294 : f32 to vector<8x128xf32>
    %608 = arith.maximumf %606, %607 : vector<8x128xf32>
    %c8_295 = arith.constant 8 : index
    %c0_296 = arith.constant 0 : index
    %609 = memref.load %arg3[%c8_295, %c0_296] : memref<10x10xf32, #tpu.memory_space<smem>>
    %610 = vector.broadcast %609 : f32 to vector<8x128xf32>
    %611 = arith.mulf %40, %610 : vector<8x128xf32>
    %c8_297 = arith.constant 8 : index
    %612 = memref.load %arg4[%c8_297] : memref<10xf32, #tpu.memory_space<smem>>
    %613 = vector.broadcast %612 : f32 to vector<8x128xf32>
    %614 = arith.addf %611, %613 : vector<8x128xf32>
    %c8_298 = arith.constant 8 : index
    %c1_299 = arith.constant 1 : index
    %615 = memref.load %arg3[%c8_298, %c1_299] : memref<10x10xf32, #tpu.memory_space<smem>>
    %616 = vector.broadcast %615 : f32 to vector<8x128xf32>
    %617 = arith.mulf %64, %616 : vector<8x128xf32>
    %618 = arith.addf %614, %617 : vector<8x128xf32>
    %c8_300 = arith.constant 8 : index
    %c2_301 = arith.constant 2 : index
    %619 = memref.load %arg3[%c8_300, %c2_301] : memref<10x10xf32, #tpu.memory_space<smem>>
    %620 = vector.broadcast %619 : f32 to vector<8x128xf32>
    %621 = arith.mulf %88, %620 : vector<8x128xf32>
    %622 = arith.addf %618, %621 : vector<8x128xf32>
    %c8_302 = arith.constant 8 : index
    %c3_303 = arith.constant 3 : index
    %623 = memref.load %arg3[%c8_302, %c3_303] : memref<10x10xf32, #tpu.memory_space<smem>>
    %624 = vector.broadcast %623 : f32 to vector<8x128xf32>
    %625 = arith.mulf %112, %624 : vector<8x128xf32>
    %626 = arith.addf %622, %625 : vector<8x128xf32>
    %c8_304 = arith.constant 8 : index
    %c4_305 = arith.constant 4 : index
    %627 = memref.load %arg3[%c8_304, %c4_305] : memref<10x10xf32, #tpu.memory_space<smem>>
    %628 = vector.broadcast %627 : f32 to vector<8x128xf32>
    %629 = arith.mulf %136, %628 : vector<8x128xf32>
    %630 = arith.addf %626, %629 : vector<8x128xf32>
    %c8_306 = arith.constant 8 : index
    %c5_307 = arith.constant 5 : index
    %631 = memref.load %arg3[%c8_306, %c5_307] : memref<10x10xf32, #tpu.memory_space<smem>>
    %632 = vector.broadcast %631 : f32 to vector<8x128xf32>
    %633 = arith.mulf %160, %632 : vector<8x128xf32>
    %634 = arith.addf %630, %633 : vector<8x128xf32>
    %c8_308 = arith.constant 8 : index
    %c6_309 = arith.constant 6 : index
    %635 = memref.load %arg3[%c8_308, %c6_309] : memref<10x10xf32, #tpu.memory_space<smem>>
    %636 = vector.broadcast %635 : f32 to vector<8x128xf32>
    %637 = arith.mulf %184, %636 : vector<8x128xf32>
    %638 = arith.addf %634, %637 : vector<8x128xf32>
    %c8_310 = arith.constant 8 : index
    %c7_311 = arith.constant 7 : index
    %639 = memref.load %arg3[%c8_310, %c7_311] : memref<10x10xf32, #tpu.memory_space<smem>>
    %640 = vector.broadcast %639 : f32 to vector<8x128xf32>
    %641 = arith.mulf %208, %640 : vector<8x128xf32>
    %642 = arith.addf %638, %641 : vector<8x128xf32>
    %c8_312 = arith.constant 8 : index
    %c8_313 = arith.constant 8 : index
    %643 = memref.load %arg3[%c8_312, %c8_313] : memref<10x10xf32, #tpu.memory_space<smem>>
    %644 = vector.broadcast %643 : f32 to vector<8x128xf32>
    %645 = arith.mulf %232, %644 : vector<8x128xf32>
    %646 = arith.addf %642, %645 : vector<8x128xf32>
    %c8_314 = arith.constant 8 : index
    %c9_315 = arith.constant 9 : index
    %647 = memref.load %arg3[%c8_314, %c9_315] : memref<10x10xf32, #tpu.memory_space<smem>>
    %648 = vector.broadcast %647 : f32 to vector<8x128xf32>
    %649 = arith.mulf %256, %648 : vector<8x128xf32>
    %650 = arith.addf %646, %649 : vector<8x128xf32>
    %cst_316 = arith.constant 0.000000e+00 : f32
    %651 = vector.broadcast %cst_316 : f32 to vector<8x128xf32>
    %652 = arith.maximumf %650, %651 : vector<8x128xf32>
    %c9_317 = arith.constant 9 : index
    %c0_318 = arith.constant 0 : index
    %653 = memref.load %arg3[%c9_317, %c0_318] : memref<10x10xf32, #tpu.memory_space<smem>>
    %654 = vector.broadcast %653 : f32 to vector<8x128xf32>
    %655 = arith.mulf %40, %654 : vector<8x128xf32>
    %c9_319 = arith.constant 9 : index
    %656 = memref.load %arg4[%c9_319] : memref<10xf32, #tpu.memory_space<smem>>
    %657 = vector.broadcast %656 : f32 to vector<8x128xf32>
    %658 = arith.addf %655, %657 : vector<8x128xf32>
    %c9_320 = arith.constant 9 : index
    %c1_321 = arith.constant 1 : index
    %659 = memref.load %arg3[%c9_320, %c1_321] : memref<10x10xf32, #tpu.memory_space<smem>>
    %660 = vector.broadcast %659 : f32 to vector<8x128xf32>
    %661 = arith.mulf %64, %660 : vector<8x128xf32>
    %662 = arith.addf %658, %661 : vector<8x128xf32>
    %c9_322 = arith.constant 9 : index
    %c2_323 = arith.constant 2 : index
    %663 = memref.load %arg3[%c9_322, %c2_323] : memref<10x10xf32, #tpu.memory_space<smem>>
    %664 = vector.broadcast %663 : f32 to vector<8x128xf32>
    %665 = arith.mulf %88, %664 : vector<8x128xf32>
    %666 = arith.addf %662, %665 : vector<8x128xf32>
    %c9_324 = arith.constant 9 : index
    %c3_325 = arith.constant 3 : index
    %667 = memref.load %arg3[%c9_324, %c3_325] : memref<10x10xf32, #tpu.memory_space<smem>>
    %668 = vector.broadcast %667 : f32 to vector<8x128xf32>
    %669 = arith.mulf %112, %668 : vector<8x128xf32>
    %670 = arith.addf %666, %669 : vector<8x128xf32>
    %c9_326 = arith.constant 9 : index
    %c4_327 = arith.constant 4 : index
    %671 = memref.load %arg3[%c9_326, %c4_327] : memref<10x10xf32, #tpu.memory_space<smem>>
    %672 = vector.broadcast %671 : f32 to vector<8x128xf32>
    %673 = arith.mulf %136, %672 : vector<8x128xf32>
    %674 = arith.addf %670, %673 : vector<8x128xf32>
    %c9_328 = arith.constant 9 : index
    %c5_329 = arith.constant 5 : index
    %675 = memref.load %arg3[%c9_328, %c5_329] : memref<10x10xf32, #tpu.memory_space<smem>>
    %676 = vector.broadcast %675 : f32 to vector<8x128xf32>
    %677 = arith.mulf %160, %676 : vector<8x128xf32>
    %678 = arith.addf %674, %677 : vector<8x128xf32>
    %c9_330 = arith.constant 9 : index
    %c6_331 = arith.constant 6 : index
    %679 = memref.load %arg3[%c9_330, %c6_331] : memref<10x10xf32, #tpu.memory_space<smem>>
    %680 = vector.broadcast %679 : f32 to vector<8x128xf32>
    %681 = arith.mulf %184, %680 : vector<8x128xf32>
    %682 = arith.addf %678, %681 : vector<8x128xf32>
    %c9_332 = arith.constant 9 : index
    %c7_333 = arith.constant 7 : index
    %683 = memref.load %arg3[%c9_332, %c7_333] : memref<10x10xf32, #tpu.memory_space<smem>>
    %684 = vector.broadcast %683 : f32 to vector<8x128xf32>
    %685 = arith.mulf %208, %684 : vector<8x128xf32>
    %686 = arith.addf %682, %685 : vector<8x128xf32>
    %c9_334 = arith.constant 9 : index
    %c8_335 = arith.constant 8 : index
    %687 = memref.load %arg3[%c9_334, %c8_335] : memref<10x10xf32, #tpu.memory_space<smem>>
    %688 = vector.broadcast %687 : f32 to vector<8x128xf32>
    %689 = arith.mulf %232, %688 : vector<8x128xf32>
    %690 = arith.addf %686, %689 : vector<8x128xf32>
    %c9_336 = arith.constant 9 : index
    %c9_337 = arith.constant 9 : index
    %691 = memref.load %arg3[%c9_336, %c9_337] : memref<10x10xf32, #tpu.memory_space<smem>>
    %692 = vector.broadcast %691 : f32 to vector<8x128xf32>
    %693 = arith.mulf %256, %692 : vector<8x128xf32>
    %694 = arith.addf %690, %693 : vector<8x128xf32>
    %cst_338 = arith.constant 0.000000e+00 : f32
    %695 = vector.broadcast %cst_338 : f32 to vector<8x128xf32>
    %696 = arith.maximumf %694, %695 : vector<8x128xf32>
    %c0_339 = arith.constant 0 : index
    %c0_340 = arith.constant 0 : index
    %697 = memref.load %arg5[%c0_339, %c0_340] : memref<2x10xf32, #tpu.memory_space<smem>>
    %698 = vector.broadcast %697 : f32 to vector<8x128xf32>
    %699 = arith.mulf %300, %698 : vector<8x128xf32>
    %c0_341 = arith.constant 0 : index
    %700 = memref.load %arg6[%c0_341] : memref<2xf32, #tpu.memory_space<smem>>
    %701 = vector.broadcast %700 : f32 to vector<8x128xf32>
    %702 = arith.addf %699, %701 : vector<8x128xf32>
    %c0_342 = arith.constant 0 : index
    %c1_343 = arith.constant 1 : index
    %703 = memref.load %arg5[%c0_342, %c1_343] : memref<2x10xf32, #tpu.memory_space<smem>>
    %704 = vector.broadcast %703 : f32 to vector<8x128xf32>
    %705 = arith.mulf %344, %704 : vector<8x128xf32>
    %706 = arith.addf %702, %705 : vector<8x128xf32>
    %c0_344 = arith.constant 0 : index
    %c2_345 = arith.constant 2 : index
    %707 = memref.load %arg5[%c0_344, %c2_345] : memref<2x10xf32, #tpu.memory_space<smem>>
    %708 = vector.broadcast %707 : f32 to vector<8x128xf32>
    %709 = arith.mulf %388, %708 : vector<8x128xf32>
    %710 = arith.addf %706, %709 : vector<8x128xf32>
    %c0_346 = arith.constant 0 : index
    %c3_347 = arith.constant 3 : index
    %711 = memref.load %arg5[%c0_346, %c3_347] : memref<2x10xf32, #tpu.memory_space<smem>>
    %712 = vector.broadcast %711 : f32 to vector<8x128xf32>
    %713 = arith.mulf %432, %712 : vector<8x128xf32>
    %714 = arith.addf %710, %713 : vector<8x128xf32>
    %c0_348 = arith.constant 0 : index
    %c4_349 = arith.constant 4 : index
    %715 = memref.load %arg5[%c0_348, %c4_349] : memref<2x10xf32, #tpu.memory_space<smem>>
    %716 = vector.broadcast %715 : f32 to vector<8x128xf32>
    %717 = arith.mulf %476, %716 : vector<8x128xf32>
    %718 = arith.addf %714, %717 : vector<8x128xf32>
    %c0_350 = arith.constant 0 : index
    %c5_351 = arith.constant 5 : index
    %719 = memref.load %arg5[%c0_350, %c5_351] : memref<2x10xf32, #tpu.memory_space<smem>>
    %720 = vector.broadcast %719 : f32 to vector<8x128xf32>
    %721 = arith.mulf %520, %720 : vector<8x128xf32>
    %722 = arith.addf %718, %721 : vector<8x128xf32>
    %c0_352 = arith.constant 0 : index
    %c6_353 = arith.constant 6 : index
    %723 = memref.load %arg5[%c0_352, %c6_353] : memref<2x10xf32, #tpu.memory_space<smem>>
    %724 = vector.broadcast %723 : f32 to vector<8x128xf32>
    %725 = arith.mulf %564, %724 : vector<8x128xf32>
    %726 = arith.addf %722, %725 : vector<8x128xf32>
    %c0_354 = arith.constant 0 : index
    %c7_355 = arith.constant 7 : index
    %727 = memref.load %arg5[%c0_354, %c7_355] : memref<2x10xf32, #tpu.memory_space<smem>>
    %728 = vector.broadcast %727 : f32 to vector<8x128xf32>
    %729 = arith.mulf %608, %728 : vector<8x128xf32>
    %730 = arith.addf %726, %729 : vector<8x128xf32>
    %c0_356 = arith.constant 0 : index
    %c8_357 = arith.constant 8 : index
    %731 = memref.load %arg5[%c0_356, %c8_357] : memref<2x10xf32, #tpu.memory_space<smem>>
    %732 = vector.broadcast %731 : f32 to vector<8x128xf32>
    %733 = arith.mulf %652, %732 : vector<8x128xf32>
    %734 = arith.addf %730, %733 : vector<8x128xf32>
    %c0_358 = arith.constant 0 : index
    %c9_359 = arith.constant 9 : index
    %735 = memref.load %arg5[%c0_358, %c9_359] : memref<2x10xf32, #tpu.memory_space<smem>>
    %736 = vector.broadcast %735 : f32 to vector<8x128xf32>
    %737 = arith.mulf %696, %736 : vector<8x128xf32>
    %738 = arith.addf %734, %737 : vector<8x128xf32>
    %c1_360 = arith.constant 1 : index
    %c0_361 = arith.constant 0 : index
    %739 = memref.load %arg5[%c1_360, %c0_361] : memref<2x10xf32, #tpu.memory_space<smem>>
    %740 = vector.broadcast %739 : f32 to vector<8x128xf32>
    %741 = arith.mulf %300, %740 : vector<8x128xf32>
    %c1_362 = arith.constant 1 : index
    %742 = memref.load %arg6[%c1_362] : memref<2xf32, #tpu.memory_space<smem>>
    %743 = vector.broadcast %742 : f32 to vector<8x128xf32>
    %744 = arith.addf %741, %743 : vector<8x128xf32>
    %c1_363 = arith.constant 1 : index
    %c1_364 = arith.constant 1 : index
    %745 = memref.load %arg5[%c1_363, %c1_364] : memref<2x10xf32, #tpu.memory_space<smem>>
    %746 = vector.broadcast %745 : f32 to vector<8x128xf32>
    %747 = arith.mulf %344, %746 : vector<8x128xf32>
    %748 = arith.addf %744, %747 : vector<8x128xf32>
    %c1_365 = arith.constant 1 : index
    %c2_366 = arith.constant 2 : index
    %749 = memref.load %arg5[%c1_365, %c2_366] : memref<2x10xf32, #tpu.memory_space<smem>>
    %750 = vector.broadcast %749 : f32 to vector<8x128xf32>
    %751 = arith.mulf %388, %750 : vector<8x128xf32>
    %752 = arith.addf %748, %751 : vector<8x128xf32>
    %c1_367 = arith.constant 1 : index
    %c3_368 = arith.constant 3 : index
    %753 = memref.load %arg5[%c1_367, %c3_368] : memref<2x10xf32, #tpu.memory_space<smem>>
    %754 = vector.broadcast %753 : f32 to vector<8x128xf32>
    %755 = arith.mulf %432, %754 : vector<8x128xf32>
    %756 = arith.addf %752, %755 : vector<8x128xf32>
    %c1_369 = arith.constant 1 : index
    %c4_370 = arith.constant 4 : index
    %757 = memref.load %arg5[%c1_369, %c4_370] : memref<2x10xf32, #tpu.memory_space<smem>>
    %758 = vector.broadcast %757 : f32 to vector<8x128xf32>
    %759 = arith.mulf %476, %758 : vector<8x128xf32>
    %760 = arith.addf %756, %759 : vector<8x128xf32>
    %c1_371 = arith.constant 1 : index
    %c5_372 = arith.constant 5 : index
    %761 = memref.load %arg5[%c1_371, %c5_372] : memref<2x10xf32, #tpu.memory_space<smem>>
    %762 = vector.broadcast %761 : f32 to vector<8x128xf32>
    %763 = arith.mulf %520, %762 : vector<8x128xf32>
    %764 = arith.addf %760, %763 : vector<8x128xf32>
    %c1_373 = arith.constant 1 : index
    %c6_374 = arith.constant 6 : index
    %765 = memref.load %arg5[%c1_373, %c6_374] : memref<2x10xf32, #tpu.memory_space<smem>>
    %766 = vector.broadcast %765 : f32 to vector<8x128xf32>
    %767 = arith.mulf %564, %766 : vector<8x128xf32>
    %768 = arith.addf %764, %767 : vector<8x128xf32>
    %c1_375 = arith.constant 1 : index
    %c7_376 = arith.constant 7 : index
    %769 = memref.load %arg5[%c1_375, %c7_376] : memref<2x10xf32, #tpu.memory_space<smem>>
    %770 = vector.broadcast %769 : f32 to vector<8x128xf32>
    %771 = arith.mulf %608, %770 : vector<8x128xf32>
    %772 = arith.addf %768, %771 : vector<8x128xf32>
    %c1_377 = arith.constant 1 : index
    %c8_378 = arith.constant 8 : index
    %773 = memref.load %arg5[%c1_377, %c8_378] : memref<2x10xf32, #tpu.memory_space<smem>>
    %774 = vector.broadcast %773 : f32 to vector<8x128xf32>
    %775 = arith.mulf %652, %774 : vector<8x128xf32>
    %776 = arith.addf %772, %775 : vector<8x128xf32>
    %c1_379 = arith.constant 1 : index
    %c9_380 = arith.constant 9 : index
    %777 = memref.load %arg5[%c1_379, %c9_380] : memref<2x10xf32, #tpu.memory_space<smem>>
    %778 = vector.broadcast %777 : f32 to vector<8x128xf32>
    %779 = arith.mulf %696, %778 : vector<8x128xf32>
    %780 = arith.addf %776, %779 : vector<8x128xf32>
    %c0_381 = arith.constant 0 : index
    %781 = arith.index_cast %1 : i32 to index
    %c0_382 = arith.constant 0 : index
    %782 = vector.load %arg8[%c0_381, %781, %c0_382] : memref<2x8x128xf32, #tpu.memory_space<vmem>>, vector<1x8x128xf32>
    %783 = vector.shape_cast %782 : vector<1x8x128xf32> to vector<8x128xf32>
    %784 = vector.shape_cast %738 : vector<8x128xf32> to vector<1x8x128xf32>
    tpu.vector_store %arg8[%c0_381, %781, %c0_382], %784 {strides = array<i32>} : memref<2x8x128xf32, #tpu.memory_space<vmem>>, vector<1x8x128xf32>,
    %c1_383 = arith.constant 1 : index
    %785 = arith.index_cast %1 : i32 to index
    %c0_384 = arith.constant 0 : index
    %786 = vector.load %arg8[%c1_383, %785, %c0_384] : memref<2x8x128xf32, #tpu.memory_space<vmem>>, vector<1x8x128xf32>
    %787 = vector.shape_cast %786 : vector<1x8x128xf32> to vector<8x128xf32>
    %788 = vector.shape_cast %780 : vector<8x128xf32> to vector<1x8x128xf32>
    tpu.vector_store %arg8[%c1_383, %785, %c0_384], %788 {strides = array<i32>} : memref<2x8x128xf32, #tpu.memory_space<vmem>>, vector<1x8x128xf32>,
    %c1_i32 = arith.constant 1 : i32
    return
  }
  func.func @transform_0(%arg0: i32) -> (i32, i32) {
    %c0_i32 = arith.constant 0 : i32
    %c0_i32_0 = arith.constant 0 : i32
    %c0_i32_1 = arith.constant 0 : i32
    return %c0_i32, %c0_i32_0 : i32, i32
  }
  func.func @transform_1(%arg0: i32) -> i32 {
    %c0_i32 = arith.constant 0 : i32
    %c0_i32_0 = arith.constant 0 : i32
    return %c0_i32 : i32
  }
  func.func @transform_2(%arg0: i32) -> (i32, i32) {
    %c0_i32 = arith.constant 0 : i32
    %c0_i32_0 = arith.constant 0 : i32
    %c0_i32_1 = arith.constant 0 : i32
    return %c0_i32, %c0_i32_0 : i32, i32
  }
  func.func @transform_3(%arg0: i32) -> i32 {
    %c0_i32 = arith.constant 0 : i32
    %c0_i32_0 = arith.constant 0 : i32
    return %c0_i32 : i32
  }
  func.func @transform_4(%arg0: i32) -> (i32, i32) {
    %c0_i32 = arith.constant 0 : i32
    %c0_i32_0 = arith.constant 0 : i32
    %c0_i32_1 = arith.constant 0 : i32
    return %c0_i32, %c0_i32_0 : i32, i32
  }
  func.func @transform_5(%arg0: i32) -> i32 {
    %c0_i32 = arith.constant 0 : i32
    %c0_i32_0 = arith.constant 0 : i32
    return %c0_i32 : i32
  }
  func.func @transform_6(%arg0: i32) -> (i32, i32, i32) {
    %c0_i32 = arith.constant 0 : i32
    %c0_i32_0 = arith.constant 0 : i32
    %c0_i32_1 = arith.constant 0 : i32
    return %c0_i32, %arg0, %c0_i32_0 : i32, i32, i32
  }
  func.func @transform_7(%arg0: i32) -> (i32, i32, i32) {
    %c0_i32 = arith.constant 0 : i32
    %c0_i32_0 = arith.constant 0 : i32
    %c0_i32_1 = arith.constant 0 : i32
    return %c0_i32, %arg0, %c0_i32_0 : i32, i32, i32
  }
}

</mosaic_0001>

<bundles_post_ra>
// kernel: tpu_custom_call.1
= control target key start
LH: loop header
LB: loop body
LE: loop exit
PB: predicated region body
PF: predicated region fallthrough
CT: control target
= control target key end

     0   :  { %s2109_s0 = inlined_call_operand.vmem [shape: f32[10,5], index: 0, kind: input, shape index: {}]   ;;  %s2110_s1 = inlined_call_operand.vmem [shape: f32[10], index: 1, kind: input, shape index: {}]   ;;  %s2111_s2 = inlined_call_operand.vmem [shape: f32[10,10], index: 2, kind: input, shape index: {}]   ;;  %s2112_s3 = inlined_call_operand.vmem [shape: f32[10], index: 3, kind: input, shape index: {}]   ;;  %s2113_s4 = inlined_call_operand.vmem [shape: f32[2,10], index: 4, kind: input, shape index: {}]   ;;  %s2114_s5 = inlined_call_operand.vmem [shape: f32[2], index: 5, kind: input, shape index: {}]   ;;  %s2115_s6 = inlined_call_operand.hbm [shape: f32[5,8,128], index: 6, kind: input, shape index: {}]   ;;  %s2116_s7 = inlined_call_operand.hbm [shape: f32[2,8,128], index: 7, kind: output, shape index: {}]  }
   0x1   :  { %2119 = sst [smem:[#allocation44_spill]] %s2116_s7 }
   0x2   :  { %12 = vsyncpa [#allocation5], 0 }
   0x3   :  { %13 = vsyncpa [#allocation7], 0 }
   0x4   :  { %14 = vsyncpa [#allocation10], 0 }
   0x5   :  { %15 = vsyncpa [#allocation13], 0 }
   0x6   :  { %16 = vsyncpa [#allocation3], 0  ;;  %s34_s26 = sshll.u32 %s2110_s1, 4  ;;  %s35_s26 = int_to_ptr.vmem [resolvable:$true] %s34_s26 }
   0x7   :  { %17 = vsyncpa [#allocation4], 0  ;;  %s54_s29 = sshll.u32 %s2112_s3, 4  ;;  %s1234_s30 = smov [#allocation6]   ;;  %s55_s29 = int_to_ptr.vmem [resolvable:$true] %s54_s29 }
   0x8   :  { %37 = dma.vmem_to_smem %s35_s26, 16, %s1234_s30, [#allocation7]  }
   0x9   :  { %s1235_s8 = smov [#allocation9]   ;;  %s22_s11 = sshll.u32 %s2109_s0, 4  ;;  %s23_s11 = int_to_ptr.vmem [resolvable:$true] %s22_s11 }
   0xa   :  { %57 = dma.vmem_to_smem %s55_s29, 16, %s1235_s8, [#allocation10]  }
   0xb   :  { %s42_s1 = sshll.u32 %s2111_s2, 4  ;;  %s1236_s14 = smov [#allocation2]   ;;  %s43_s1 = int_to_ptr.vmem [resolvable:$true] %s42_s1 }
   0xc   :  { %s2117_s15 = smov 128   ;;  %s2118_s16 = smov 8  }
   0xd   :  { %28 = dma.vmem_to_smem %s23_s11, 256, %s1236_s14, [#allocation5], %s2117_s15, %s2117_s15, %s2118_s16  }
   0xe   :  { %s1239_s3 = smov [#allocation8]   ;;  %s63_s18 = sshll.u32 %s2113_s4, 4  ;;  %s64_s18 = int_to_ptr.vmem [resolvable:$true] %s63_s18 }
   0xf   :  { %48 = dma.vmem_to_smem %s43_s1, 256, %s1239_s3, [#allocation7], %s2117_s15, %s2117_s15, %s2118_s16  }
  0x10   :  { %s72_s20 = sshll.u32 %s2114_s5, 4  ;;  %s1240_s21 = smov [#allocation11]   ;;  %s73_s20 = int_to_ptr.vmem [resolvable:$true] %s72_s20 }
  0x11   :  { %66 = dma.vmem_to_smem %s64_s18, 32, %s1240_s21, [#allocation10]  }
  0x12   :  { %s1241_s22 = smov [#allocation12]   ;;  %s80_s25 = sshll.u32 %s2115_s6, 4  ;;  %s81_s25 = int_to_ptr.hbm [resolvable:$true] %s80_s25 }
  0x13   :  { %75 = dma.vmem_to_smem %s73_s20, 16, %s1241_s22, [#allocation13]  }
  0x14   :  { %s1242_s26 = smov [#allocation14]  }
  0x15   :  { %s82_s27 = sshll.u32 %s1242_s26, 4  ;;  %s83_s27 = int_to_ptr.vmem [resolvable:$true] %s82_s27 }
  0x16   :  { %88 = dma.hbm_to_vmem [thread:$0]  %s81_s25, 640, %s83_s27, [#allocation3], %s2117_s15, %s2117_s15, %s2118_s16  }
  0x17   :  { %1222 = dma.done.wait [#allocation5], 256  }
  0x18   :  { %1223 = vsyncadd [#allocation5], 4294967040 }
  0x19   :  { %1224 = dma.done.wait [#allocation7], 272  }
  0x1a   :  { %1225 = vsyncadd [#allocation7], 4294967024 }
  0x1b   :  { %1226 = dma.done.wait [#allocation10], 48  }
  0x1c   :  { %1227 = vsyncadd [#allocation10], 4294967248 }
  0x1d   :  { %1228 = dma.done.wait [#allocation13], 16  }
  0x1e   :  { %1229 = vsyncadd [#allocation13], 4294967280 }
  0x1f   :  { %1230 = dma.done.wait [#allocation3], 640  }
  0x20   :  { %1231 = vsyncadd [#allocation3], 4294966656 }
  0x21   :  { %117 = sfence }
  0x22   :  { %s1314_s4 = sld [smem:[#allocation2]]  ;;  %v1410_v0 = vld [vmem:[#allocation14] sm:$0xff]  ;;  %v1428_v7 = vld [vmem:[#allocation14 + $0x8] sm:$0xff]  ;;  %v1449_v20 = vld [vmem:[#allocation14 + $0x10] sm:$0xff] }
  0x23   :  { %s1316_s5 = sld [smem:[#allocation6]]  ;;  %v1460_v28 = vld [vmem:[#allocation14 + $0x18] sm:$0xff]  ;;  %v1483_v45 = vld [vmem:[#allocation14 + $0x20] sm:$0xff] }
  0x24   :  { %s1318_s6 = sld [smem:[#allocation2 + $0x1]] }
  0x25   :  { %s1320_s28 = sld [smem:[#allocation2 + $0x2]] }
  0x26   :  { %s1322_s29 = sld [smem:[#allocation2 + $0x3]] }
  0x27   :  { %s1324_s30 = sld [smem:[#allocation2 + $0x4]] }
  0x28   :  { %s1326_s8 = sld [smem:[#allocation2 + $0x80]]  ;;  %v132_v1 = vstv %s1314_s4 }
  0x29   :  { %s1328_s9 = sld [smem:[#allocation6 + $0x1]]  ;;  %v133_v3 = vmul.f32 %v132_v1, %v1410_v0  ;;  %v135_v5 = vstv %s1316_s5 }
  0x2a   :  { %s1330_s10 = sld [smem:[#allocation2 + $0x81]]  ;;  %v138_v8 = vstv %s1318_s6 }
  0x2b   :  { %s1332_s11 = sld [smem:[#allocation2 + $0x82]]  ;;  %v136_v13 = vadd.f32 %v135_v5, %v133_v3  ;;  %v139_v16 = vmul.f32 %v138_v8, %v1428_v7  ;;  %v142_v21 = vstv %s1320_s28 }
  0x2c   :  { %s1334_s12 = sld [smem:[#allocation2 + $0x83]]  ;;  %v146_v25 = vstv %s1322_s29  ;;  %v143_v34 = vmul.f32 %v142_v21, %v1449_v20 }
  0x2d   :  { %s1336_s13 = sld [smem:[#allocation2 + $0x84]]  ;;  %v140_v33 = vadd.f32 %v139_v16, %v136_v13  ;;  %v147_v41 = vmul.f32 %v146_v25, %v1460_v28  ;;  %v150_v42 = vstv %s1324_s30 }
  0x2e   :  { %s1338_s1 = sld [smem:[#allocation2 + $0x100]]  ;;  %v155_v2 = vstv %s1326_s8  ;;  %v151_v57 = vmul.f32 %v150_v42, %v1483_v45 }
  0x2f   :  { %s1340_s14 = sld [smem:[#allocation6 + $0x2]]  ;;  %v156_v9 = vmul.f32 %v155_v2, %v1410_v0  ;;  %v158_v10 = vstv %s1328_s9  ;;  %v144_v50 = vadd.f32 %v143_v34, %v140_v33 }
  0x30   :  { %s1342_s3 = sld [smem:[#allocation2 + $0x101]]  ;;  %v161_v11 = vstv %s1330_s10 }
  0x31   :  { %s1344_s17 = sld [smem:[#allocation2 + $0x102]]  ;;  %v159_v22 = vadd.f32 %v158_v10, %v156_v9  ;;  %v162_v23 = vmul.f32 %v161_v11, %v1428_v7  ;;  %v165_v26 = vstv %s1332_s11  ;;  %v148_v2 = vadd.f32 %v147_v41, %v144_v50 }
  0x32   :  { %2120 = sst [smem:[#allocation22_spill]] %s1334_s12  ;;  %v166_v38 = vmul.f32 %v165_v26, %v1449_v20 }
  0x33   :  { %2121 = sst [smem:[#allocation23_spill]] %s1336_s13  ;;  %v163_v37 = vadd.f32 %v162_v23, %v159_v22 }
  0x34   :  { %s1346_s0 = sld [smem:[#allocation2 + $0x103]]  ;;  %v178_v4 = vstv %s1338_s1 }
  0x35   :  { %s1348_s18 = sld [smem:[#allocation2 + $0x104]]  ;;  %v179_v12 = vmul.f32 %v178_v4, %v1410_v0  ;;  %v181_v14 = vstv %s1340_s14  ;;  %v167_v54 = vadd.f32 %v166_v38, %v163_v37 }
  0x36   :  { %s1350_s19 = sld [smem:[#allocation2 + $0x180]]  ;;  %v184_v17 = vstv %s1342_s3 }
  0x37   :  { %s1352_s2 = sld [smem:[#allocation6 + $0x3]]  ;;  %v182_v27 = vadd.f32 %v181_v14, %v179_v12  ;;  %v185_v29 = vmul.f32 %v184_v17, %v1428_v7  ;;  %v188_v30 = vstv %s1344_s17 }
  0x38   :  { %s1354_s20 = sld [smem:[#allocation2 + $0x181]]  ;;  %v189_v44 = vmul.f32 %v188_v30, %v1449_v20 }
  0x39   :  { %s1356_s21 = sld [smem:[#allocation2 + $0x182]]  ;;  %v186_v46 = vadd.f32 %v185_v29, %v182_v27 }
  0x3a   :  { %2122 = sst [smem:[#allocation24_spill]] %s1346_s0 }
  0x3b   :  { %2123 = sst [smem:[#allocation25_spill]] %s1348_s18  ;;  %v190_v61 = vadd.f32 %v189_v44, %v186_v46 }
  0x3c   :  { %s1358_s22 = sld [smem:[#allocation2 + $0x183]]  ;;  %v201_v6 = vstv %s1350_s19 }
  0x3d   :  { %s1360_s23 = sld [smem:[#allocation2 + $0x184]]  ;;  %v202_v15 = vmul.f32 %v201_v6, %v1410_v0  ;;  %v204_v18 = vstv %s1352_s2 }
  0x3e   :  { %s1362_s24 = sld [smem:[#allocation2 + $0x200]]  ;;  %v207_v19 = vstv %s1354_s20 }
  0x3f   :  { %s1364_s25 = sld [smem:[#allocation6 + $0x4]]  ;;  %v205_v31 = vadd.f32 %v204_v18, %v202_v15  ;;  %v208_v32 = vmul.f32 %v207_v19, %v1428_v7  ;;  %v211_v35 = vstv %s1356_s21  ;;  %v152_v18 = vadd.f32 %v151_v57, %v148_v2 }
  0x40   :  { %s1366_s26 = sld [smem:[#allocation2 + $0x201]]  ;;  %v212_v49 = vmul.f32 %v211_v35, %v1449_v20 }
  0x41   :  { %s1368_s27 = sld [smem:[#allocation2 + $0x202]]  ;;  %v209_v48 = vadd.f32 %v208_v32, %v205_v31 }
  0x42   :  { %2124 = sst [smem:[#allocation26_spill]] %s1358_s22 }
  0x43   :  { %2125 = sst [smem:[#allocation27_spill]] %s1360_s23  ;;  %v213_v63 = vadd.f32 %v212_v49, %v209_v48 }
  0x44   :  { %s1370_s15 = sld [smem:[#allocation2 + $0x203]]  ;;  %v224_v24 = vstv %s1362_s24 }
  0x45   :  { %s1372_s16 = sld [smem:[#allocation2 + $0x204]]  ;;  %v225_v36 = vmul.f32 %v224_v24, %v1410_v0  ;;  %v227_v39 = vstv %s1364_s25 }
  0x46   :  { %s1374_s7 = sld [smem:[#allocation2 + $0x280]]  ;;  %v230_v40 = vstv %s1366_s26 }
  0x47   :  { %2126 = sst [smem:[#allocation28_spill]] %s1368_s27  ;;  %v228_v52 = vadd.f32 %v227_v39, %v225_v36  ;;  %v231_v53 = vmul.f32 %v230_v40, %v1428_v7  ;;  %v1544_v36 = vmax.f32 %v152_v18, 0.0 }
  0x48   :  { %s1376_s18 = sld [smem:[#allocation6 + $0x5]] }
  0x49   :  { %s1378_s13 = sld [smem:[#allocation2 + $0x281]]  ;;  %v232_v4 = vadd.f32 %v231_v53, %v228_v52 }
  0x4a   :  { %2127 = sst [smem:[#allocation29_spill]] %s1370_s15 }
  0x4b   :  { %2128 = sst [smem:[#allocation30_spill]] %s1372_s16 }
  0x4c   :  { %s1380_s22 = sld [smem:[#allocation2 + $0x282]]  ;;  %v247_v60 = vstv %s1374_s7 }
  0x4d   :  { %s1382_s23 = sld [smem:[#allocation2 + $0x283]]  ;;  %v248_v10 = vmul.f32 %v247_v60, %v1410_v0 }
  0x4e   :  { %2129 = sst [smem:[#allocation31_spill]] %s1376_s18 }
  0x4f   :  { %2130 = sst [smem:[#allocation32_spill]] %s1378_s13 }
  0x50   :  { %s1384_s0 = sld [smem:[#allocation2 + $0x284]] }
  0x51   :  { %s1386_s12 = sld [smem:[#allocation2 + $0x300]] }
  0x52   :  { %2131 = sst [smem:[#allocation33_spill]] %s1380_s22 }
  0x53   :  { %2132 = sst [smem:[#allocation34_spill]] %s1382_s23 }
  0x54   :  { %s1388_s27 = sld [smem:[#allocation6 + $0x6]] }
  0x55   :  { %s1390_s15 = sld [smem:[#allocation2 + $0x301]] }
  0x56   :  { %2133 = sst [smem:[#allocation35_spill]] %s1384_s0 }
  0x57   :  { %2134 = sst [smem:[#allocation36_spill]] %s1386_s12 }
  0x58   :  { %s1392_s16 = sld [smem:[#allocation2 + $0x302]] }
  0x59   :  { %s1394_s18 = sld [smem:[#allocation2 + $0x303]] }
  0x5a   :  { %2135 = sst [smem:[#allocation37_spill]] %s1388_s27 }
  0x5b   :  { %2136 = sst [smem:[#allocation38_spill]] %s1390_s15 }
  0x5c   :  { %s1396_s13 = sld [smem:[#allocation2 + $0x304]] }
  0x5d   :  { %s1398_s22 = sld [smem:[#allocation2 + $0x380]] }
  0x5e   :  { %s1400_s23 = sld [smem:[#allocation6 + $0x7]] }
  0x5f   :  { %2137 = sst [smem:[#allocation39_spill]] %s1394_s18 }
  0x60   :  { %s1402_s0 = sld [smem:[#allocation2 + $0x381]] }
  0x61   :  { %s1404_s12 = sld [smem:[#allocation2 + $0x382]] }
  0x62   :  { %2138 = sst [smem:[#allocation40_spill]] %s1396_s13 }
  0x63   :  { %s1406_s27 = sld [smem:[#allocation2 + $0x383]]  ;;  %v293_v35 = vstv %s1398_s22 }
  0x64   :  { %2139 = sst [smem:[#allocation41_spill]] %s1400_s23  ;;  %v294_v48 = vmul.f32 %v293_v35, %v1410_v0 }
  0x65   :  { %s1408_s15 = sld [smem:[#allocation2 + $0x384]] }
  0x66   :  { %s1413_s13 = sld [smem:[#allocation2 + $0x400]]  ;;  %v299_v52 = vstv %s1402_s0 }
  0x67   :  { %2140 = sst [smem:[#allocation42_spill]] %s1404_s12 }
  0x68   :  { %s1415_s18 = sld [smem:[#allocation6 + $0x8]] }
  0x69   :  { %s1418_s23 = sld [smem:[#allocation2 + $0x401]]  ;;  %v307_v18 = vstv %s1406_s27 }
  0x6a   :  { %s1422_s12 = sld [smem:[#allocation2 + $0x402]] }
  0x6b   :  { %2141 = sst [smem:[#allocation43_spill]] %s1408_s15 }
  0x6c   :  { %s1426_s15 = sld [smem:[#allocation2 + $0x403]] }
  0x6d   :  { %s1432_s4 = sld [smem:[#allocation2 + $0x404]] }
  0x6e   :  { %s1437_s5 = sld [smem:[#allocation2 + $0x480]] }
  0x6f   :  { %s1441_s8 = sld [smem:[#allocation6 + $0x9]] }
  0x70   :  { %s1447_s6 = sld [smem:[#allocation2 + $0x481]] }
  0x71   :  { %s1454_s9 = sld [smem:[#allocation2 + $0x482]] }
  0x72   :  { %s1458_s10 = sld [smem:[#allocation2 + $0x483]] }
  0x73   :  { %s2142_s28 = sld [smem:[#allocation22_spill]] }
  0x74   :  { %s1465_s1 = sld [smem:[#allocation2 + $0x484]] }
  0x75   :  { %s2144_s29 = sld [smem:[#allocation24_spill]] }
  0x76   :  { %s1470_s11 = sld [smem:[#allocation8]] }
  0x77   :  { %s2145_s14 = sld [smem:[#allocation26_spill]] }
  0x78   :  { %s1475_s3 = sld [smem:[#allocation9]] }
  0x79   :  { %v169_v43 = vstv %s2142_s28  ;;  %s2146_s17 = sld [smem:[#allocation28_spill]] }
  0x7a   :  { %2143 = sst [smem:[#allocation22_spill]] %s1465_s1  ;;  %v170_v55 = vmul.f32 %v169_v43, %v1460_v28 }
  0x7b   :  { %s1481_s19 = sld [smem:[#allocation8 + $0x1]]  ;;  %v192_v47 = vstv %s2144_s29 }
  0x7c   :  { %s2147_s2 = sld [smem:[#allocation23_spill]]  ;;  %v193_v59 = vmul.f32 %v192_v47, %v1460_v28  ;;  %v171_v6 = vadd.f32 %v170_v55, %v167_v54  ;;  %v362_v43 = vstv %s1470_s11  ;;  %v280_v47 = vstv %s1392_s16 }
  0x7d   :  { %s1487_s20 = sld [smem:[#allocation8 + $0x2]]  ;;  %v215_v51 = vstv %s2145_s14  ;;  %v316_v55 = vstv %s1413_s13 }
  0x7e   :  { %s2148_s21 = sld [smem:[#allocation25_spill]]  ;;  %v216_v1 = vmul.f32 %v215_v51, %v1460_v28  ;;  %v194_v14 = vadd.f32 %v193_v59, %v190_v61  ;;  %v365_v59 = vstv %s1475_s3 }
  0x7f   :  { %s1491_s30 = sld [smem:[#allocation8 + $0x3]]  ;;  %v234_v56 = vstv %s2146_s17 }
  0x80   :  { %s2149_s24 = sld [smem:[#allocation27_spill]]  ;;  %v235_v5 = vmul.f32 %v234_v56, %v1449_v20  ;;  %v217_v15 = vadd.f32 %v216_v1, %v213_v63  ;;  %v363_v56 = vmul.f32 %v362_v43, %v1544_v36  ;;  %v300_v1 = vmul.f32 %v299_v52, %v1428_v7 }
  0x81   :  { %s1495_s25 = sld [smem:[#allocation8 + $0x4]]  ;;  %v368_v60 = vstv %s1481_s19  ;;  %v349_v43 = vstv %s1454_s9 }
  0x82   :  { %v173_v58 = vstv %s2147_s2  ;;  %s2150_s26 = sld [smem:[#allocation29_spill]]  ;;  %v236_v19 = vadd.f32 %v235_v5, %v232_v4  ;;  %v317_v4 = vmul.f32 %v316_v55, %v1410_v0  ;;  %v319_v5 = vstv %s1415_s18 }
  0x83   :  { %s1501_s28 = sld [smem:[#allocation8 + $0x5]]  ;;  %v174_v8 = vmul.f32 %v173_v58, %v1483_v45  ;;  %v281_v58 = vmul.f32 %v280_v47, %v1449_v20 }
  0x84   :  { %s2152_s29 = sld [smem:[#allocation31_spill]]  ;;  %v196_v62 = vstv %s2148_s21 }
  0x85   :  { %s2153_s14 = sld [smem:[#allocation32_spill]]  ;;  %v197_v11 = vmul.f32 %v196_v62, %v1483_v45  ;;  %v175_v22 = vadd.f32 %v174_v8, %v171_v6  ;;  %v322_v6 = vstv %s1418_s23  ;;  %v339_v8 = vstv %s1437_s5 }
  0x86   :  { %s1505_s1 = sld [smem:[#allocation8 + $0x6]]  ;;  %v219_v3 = vstv %s2149_s24 }
  0x87   :  { %s2155_s17 = sld [smem:[#allocation36_spill]]  ;;  %v220_v16 = vmul.f32 %v219_v3, %v1483_v45  ;;  %v198_v29 = vadd.f32 %v197_v11, %v194_v14  ;;  %v1546_v37 = vmax.f32 %v175_v22, 0.0  ;;  %v372_v14 = vstv %s1487_s20 }
  0x88   :  { %s1509_s2 = sld [smem:[#allocation8 + $0x7]]  ;;  %v238_v9 = vstv %s2150_s26  ;;  %v326_v22 = vstv %s1422_s12 }
  0x89   :  { %2151 = sst [smem:[#allocation24_spill]] %s1501_s28  ;;  %v239_v21 = vmul.f32 %v238_v9, %v1460_v28  ;;  %v221_v30 = vadd.f32 %v220_v16, %v217_v15  ;;  %v1556_v44 = vmax.f32 %v198_v29, 0.0  ;;  %v366_v9 = vadd.f32 %v365_v59, %v363_v56 }
  0x8a   :  { %s2157_s7 = sld [smem:[#allocation30_spill]]  ;;  %v250_v12 = vstv %s2152_s29  ;;  %v350_v59 = vmul.f32 %v349_v43, %v1449_v20 }
  0x8b   :  { %s1514_s21 = sld [smem:[#allocation8 + $0x8]]  ;;  %v253_v13 = vstv %s2153_s14  ;;  %v251_v24 = vadd.f32 %v250_v12, %v248_v10  ;;  %v240_v33 = vadd.f32 %v239_v21, %v236_v19  ;;  %v1558_v46 = vmax.f32 %v221_v30, 0.0 }
  0x8c   :  { %2154 = sst [smem:[#allocation26_spill]] %s1505_s1  ;;  %v254_v25 = vmul.f32 %v253_v13, %v1428_v7  ;;  %v369_v10 = vmul.f32 %v368_v60, %v1546_v37  ;;  %v320_v19 = vadd.f32 %v319_v5, %v317_v4  ;;  %v323_v21 = vmul.f32 %v322_v6, %v1428_v7 }
  0x8d   :  { %s2159_s24 = sld [smem:[#allocation33_spill]]  ;;  %v270_v17 = vstv %s2155_s17  ;;  %v334_v60 = vstv %s1432_s4 }
  0x8e   :  { %2156 = sst [smem:[#allocation28_spill]] %s1509_s2  ;;  %v271_v27 = vmul.f32 %v270_v17, %v1410_v0  ;;  %v255_v38 = vadd.f32 %v254_v25, %v251_v24  ;;  %v342_v24 = vstv %s1441_s8  ;;  %v345_v25 = vstv %s1447_s6 }
  0x8f   :  { %s1519_s1 = sld [smem:[#allocation8 + $0x9]] }
  0x90   :  { %s2161_s2 = sld [smem:[#allocation37_spill]]  ;;  %v242_v23 = vstv %s2157_s7 }
  0x91   :  { %2158 = sst [smem:[#allocation23_spill]] %s1514_s21  ;;  %v243_v34 = vmul.f32 %v242_v23, %v1483_v45  ;;  %v340_v23 = vmul.f32 %v339_v8, %v1410_v0  ;;  %v308_v0 = vmul.f32 %v307_v18, %v1460_v28 }
  0x92   :  { %s1523_s28 = sld [smem:[#allocation8 + $0x80]] }
  0x93   :  { %s2162_s26 = sld [smem:[#allocation38_spill]]  ;;  %v257_v26 = vstv %s2159_s24  ;;  %v244_v49 = vadd.f32 %v243_v34, %v240_v33 }
  0x94   :  { %s1526_s21 = sld [smem:[#allocation9 + $0x1]]  ;;  %v258_v39 = vmul.f32 %v257_v26, %v1449_v20  ;;  %v370_v26 = vadd.f32 %v369_v10, %v366_v9  ;;  %v335_v9 = vmul.f32 %v334_v60, %v1483_v45 }
  0x95   :  { %2160 = sst [smem:[#allocation25_spill]] %s1519_s1  ;;  %v1584_v2 = vmax.f32 %v244_v49, 0.0 }
  0x96   :  { %s1530_s29 = sld [smem:[#allocation8 + $0x81]]  ;;  %v273_v31 = vstv %s2161_s2  ;;  %v259_v53 = vadd.f32 %v258_v39, %v255_v38  ;;  %v324_v38 = vadd.f32 %v323_v21, %v320_v19  ;;  %v327_v39 = vmul.f32 %v326_v22, %v1449_v20 }
  0x97   :  { %s2163_s14 = sld [smem:[#allocation34_spill]]  ;;  %v274_v41 = vadd.f32 %v273_v31, %v271_v27  ;;  %v373_v27 = vmul.f32 %v372_v14, %v1556_v44 }
  0x98   :  { %s1534_s17 = sld [smem:[#allocation8 + $0x82]]  ;;  %v405_v35 = vstv %s1523_s28  ;;  %v328_v56 = vadd.f32 %v327_v39, %v324_v38 }
  0x99   :  { %v276_v32 = vstv %s2162_s26  ;;  %s1538_s1 = sld [smem:[#allocation8 + $0x83]]  ;;  %v374_v47 = vadd.f32 %v373_v27, %v370_v26  ;;  %v406_v52 = vmul.f32 %v405_v35, %v1544_v36 }
  0x9a   :  { %s1542_s7 = sld [smem:[#allocation8 + $0x84]]  ;;  %v277_v42 = vmul.f32 %v276_v32, %v1428_v7  ;;  %v376_v32 = vstv %s1491_s30 }
  0x9b   :  { %s2165_s24 = sld [smem:[#allocation35_spill]] }
  0x9c   :  { %s1549_s2 = sld [smem:[#allocation8 + $0x85]]  ;;  %v278_v57 = vadd.f32 %v277_v42, %v274_v41  ;;  %v346_v41 = vmul.f32 %v345_v25, %v1428_v7  ;;  %v330_v42 = vstv %s1426_s15  ;;  %v411_v55 = vstv %s1530_s29 }
  0x9d   :  { %v261_v40 = vstv %s2163_s14  ;;  %s1554_s22 = sld [smem:[#allocation8 + $0x86]]  ;;  %v412_v4 = vmul.f32 %v411_v55, %v1546_v37 }
  0x9e   :  { %2164 = sst [smem:[#allocation27_spill]] %s1534_s17  ;;  %v262_v54 = vmul.f32 %v261_v40, %v1460_v28  ;;  %v282_v12 = vadd.f32 %v281_v58, %v278_v57  ;;  %v343_v40 = vadd.f32 %v342_v24, %v340_v23  ;;  %v331_v57 = vmul.f32 %v330_v42, %v1460_v28 }
  0x9f   :  { %s2166_s17 = sld [smem:[#allocation41_spill]] }
  0xa0   :  { %s1562_s26 = sld [smem:[#allocation8 + $0x87]]  ;;  %v263_v11 = vadd.f32 %v262_v54, %v259_v53  ;;  %v408_v54 = vstv %s1526_s21  ;;  %v347_v58 = vadd.f32 %v346_v41, %v343_v40  ;;  %v332_v8 = vadd.f32 %v331_v57, %v328_v56 }
  0xa1   :  { %s2168_s14 = sld [smem:[#allocation39_spill]]  ;;  %v265_v50 = vstv %s2165_s24 }
  0xa2   :  { %2167 = sst [smem:[#allocation29_spill]] %s1549_s2  ;;  %v266_v61 = vmul.f32 %v265_v50, %v1483_v45  ;;  %v351_v10 = vadd.f32 %v350_v59, %v347_v58  ;;  %v336_v21 = vadd.f32 %v335_v9, %v332_v8 }
  0xa3   :  { %s1567_s2 = sld [smem:[#allocation8 + $0x88]]  ;;  %v431_v59 = vstv %s1554_s22 }
  0xa4   :  { %s2169_s11 = sld [smem:[#allocation42_spill]]  ;;  %v267_v29 = vadd.f32 %v266_v61, %v263_v11  ;;  %v353_v61 = vstv %s1458_s10 }
  0xa5   :  { %v296_v51 = vstv %s2166_s17  ;;  %s1572_s16 = sld [smem:[#allocation8 + $0x89]]  ;;  %v354_v11 = vmul.f32 %v353_v61, %v1460_v28 }
  0xa6   :  { %s1577_s0 = sld [smem:[#allocation8 + $0x100]]  ;;  %v297_v63 = vadd.f32 %v296_v51, %v294_v48  ;;  %v377_v48 = vmul.f32 %v376_v32, %v1558_v46  ;;  %v1633_v49 = vmax.f32 %v267_v29, 0.0  ;;  %v380_v51 = vstv %s1495_s25 }
  0xa7   :  { %v284_v62 = vstv %s2168_s14  ;;  %s1582_s13 = sld [smem:[#allocation9 + $0x2]]  ;;  %v355_v22 = vadd.f32 %v354_v11, %v351_v10  ;;  %v435_v60 = vstv %s1562_s26 }
  0xa8   :  { %s2170_s17 = sld [smem:[#allocation40_spill]]  ;;  %v285_v13 = vmul.f32 %v284_v62, %v1460_v28  ;;  %v301_v16 = vadd.f32 %v300_v1, %v297_v63  ;;  %v378_v62 = vadd.f32 %v377_v48, %v374_v47  ;;  %v381_v63 = vmul.f32 %v380_v51, %v1584_v2 }
  0xa9   :  { %s1589_s3 = sld [smem:[#allocation8 + $0x101]]  ;;  %v419_v28 = vstv %s1538_s1 }
  0xaa   :  { %v303_v3 = vstv %s2169_s11  ;;  %s1594_s19 = sld [smem:[#allocation8 + $0x102]]  ;;  %v286_v30 = vadd.f32 %v285_v13, %v282_v12  ;;  %v382_v13 = vadd.f32 %v381_v63, %v378_v62  ;;  %v420_v32 = vmul.f32 %v419_v28, %v1558_v46 }
  0xab   :  { %s1598_s24 = sld [smem:[#allocation8 + $0x103]]  ;;  %v304_v17 = vmul.f32 %v303_v3, %v1449_v20  ;;  %v409_v3 = vadd.f32 %v408_v54, %v406_v52 }
  0xac   :  { %s1603_s18 = sld [smem:[#allocation8 + $0x104]] }
  0xad   :  { %s2171_s23 = sld [smem:[#allocation43_spill]]  ;;  %v305_v33 = vadd.f32 %v304_v17, %v301_v16  ;;  %v413_v17 = vadd.f32 %v412_v4, %v409_v3  ;;  %v451_v27 = vstv %s1582_s13 }
  0xae   :  { %v288_v15 = vstv %s2170_s17  ;;  %s1608_s5 = sld [smem:[#allocation8 + $0x105]] }
  0xaf   :  { %s1613_s20 = sld [smem:[#allocation8 + $0x106]]  ;;  %v289_v31 = vmul.f32 %v288_v15, %v1483_v45  ;;  %v309_v7 = vadd.f32 %v308_v0, %v305_v33  ;;  %v448_v15 = vstv %s1577_s0  ;;  %v454_v29 = vstv %s1589_s3 }
  0xb0   :  { %s1617_s12 = sld [smem:[#allocation8 + $0x107]]  ;;  %v449_v24 = vmul.f32 %v448_v15, %v1544_v36  ;;  %v1696_v33 = vmax.f32 %v336_v21, 0.0  ;;  %v458_v40 = vstv %s1594_s19 }
  0xb1   :  { %s1622_s27 = sld [smem:[#allocation8 + $0x108]]  ;;  %v290_v50 = vadd.f32 %v289_v31, %v286_v30  ;;  %v462_v54 = vstv %s1598_s24 }
  0xb2   :  { %s1626_s8 = sld [smem:[#allocation8 + $0x109]]  ;;  %v452_v0 = vadd.f32 %v451_v27, %v449_v24  ;;  %v463_v63 = vmul.f32 %v462_v54, %v1558_v46 }
  0xb3   :  { %v311_v34 = vstv %s2171_s23  ;;  %s1631_s6 = sld [smem:[#allocation8 + $0x180]]  ;;  %v1657_v5 = vmax.f32 %v290_v50, 0.0  ;;  %v459_v50 = vmul.f32 %v458_v40, %v1556_v44 }
  0xb4   :  { %s1637_s30 = sld [smem:[#allocation9 + $0x3]]  ;;  %v312_v53 = vmul.f32 %v311_v34, %v1483_v45  ;;  %v455_v34 = vmul.f32 %v454_v29, %v1546_v37  ;;  %v470_v21 = vstv %s1608_s5 }
  0xb5   :  { %s2172_s28 = sld [smem:[#allocation24_spill]]  ;;  %v432_v10 = vmul.f32 %v431_v59, %v1657_v5  ;;  %v474_v40 = vstv %s1613_s20 }
  0xb6   :  { %s1642_s15 = sld [smem:[#allocation8 + $0x181]]  ;;  %v313_v20 = vadd.f32 %v312_v53, %v309_v7  ;;  %v456_v48 = vadd.f32 %v455_v34, %v452_v0 }
  0xb7   :  { %s2173_s9 = sld [smem:[#allocation27_spill]] }
  0xb8   :  { %s1646_s25 = sld [smem:[#allocation8 + $0x182]]  ;;  %v1675_v19 = vmax.f32 %v313_v20, 0.0  ;;  %v460_v62 = vadd.f32 %v459_v50, %v456_v48 }
  0xb9   :  { %s2174_s14 = sld [smem:[#allocation22_spill]]  ;;  %v491_v51 = vstv %s1631_s6 }
  0xba   :  { %s1651_s11 = sld [smem:[#allocation8 + $0x183]]  ;;  %v492_v61 = vmul.f32 %v491_v51, %v1544_v36 }
  0xbb   :  { %v384_v1 = vstv %s2172_s28  ;;  %s2175_s21 = sld [smem:[#allocation26_spill]] }
  0xbc   :  { %s1655_s29 = sld [smem:[#allocation8 + $0x184]]  ;;  %v385_v14 = vmul.f32 %v384_v1, %v1633_v49  ;;  %v494_v1 = vstv %s1637_s30  ;;  %v497_v3 = vstv %s1642_s15 }
  0xbd   :  { %v415_v6 = vstv %s2173_s9  ;;  %s1660_s4 = sld [smem:[#allocation8 + $0x185]]  ;;  %v498_v15 = vmul.f32 %v497_v3, %v1546_v37 }
  0xbe   :  { %s1664_s10 = sld [smem:[#allocation8 + $0x186]]  ;;  %v416_v18 = vmul.f32 %v415_v6, %v1556_v44  ;;  %v386_v25 = vadd.f32 %v385_v14, %v382_v13  ;;  %v466_v6 = vstv %s1603_s18  ;;  %v436_v13 = vmul.f32 %v435_v60, %v1675_v19 }
  0xbf   :  { %v357_v12 = vstv %s2174_s14  ;;  %s1669_s17 = sld [smem:[#allocation8 + $0x187]]  ;;  %v495_v14 = vadd.f32 %v494_v1, %v492_v61  ;;  %v501_v28 = vstv %s1646_s25 }
  0xc0   :  { %s2177_s23 = sld [smem:[#allocation28_spill]]  ;;  %v358_v23 = vmul.f32 %v357_v12, %v1483_v45  ;;  %v417_v31 = vadd.f32 %v416_v18, %v413_v17  ;;  %v423_v45 = vstv %s1542_s7  ;;  %v464_v17 = vadd.f32 %v463_v63, %v460_v62 }
  0xc1   :  { %v388_v16 = vstv %s2175_s21  ;;  %s1673_s28 = sld [smem:[#allocation8 + $0x188]]  ;;  %v424_v43 = vmul.f32 %v423_v45, %v1584_v2  ;;  %v467_v18 = vmul.f32 %v466_v6, %v1584_v2 }
  0xc2   :  { %s1678_s9 = sld [smem:[#allocation8 + $0x189]]  ;;  %v389_v26 = vmul.f32 %v388_v16, %v1657_v5  ;;  %v359_v35 = vadd.f32 %v358_v23, %v355_v22  ;;  %v421_v42 = vadd.f32 %v420_v32, %v417_v31  ;;  %v439_v16 = vstv %s1567_s2 }
  0xc3   :  { %s1682_s0 = sld [smem:[#allocation8 + $0x200]]  ;;  %v502_v31 = vmul.f32 %v501_v28, %v1556_v44  ;;  %v440_v0 = vmul.f32 %v439_v16, %v1696_v33  ;;  %v468_v34 = vadd.f32 %v467_v18, %v464_v17 }
  0xc4   :  { %s1687_s14 = sld [smem:[#allocation9 + $0x4]]  ;;  %v390_v38 = vadd.f32 %v389_v26, %v386_v25  ;;  %v1716_v52 = vmax.f32 %v359_v35, 0.0  ;;  %v425_v56 = vadd.f32 %v424_v43, %v421_v42  ;;  %v471_v35 = vmul.f32 %v470_v21, %v1633_v49 }
  0xc5   :  { %2176 = sst [smem:[#allocation31_spill]] %s1669_s17 }
  0xc6   :  { %s2180_s1 = sld [smem:[#allocation23_spill]]  ;;  %v392_v30 = vstv %s2177_s23  ;;  %v472_v54 = vadd.f32 %v471_v35, %v468_v34 }
  0xc7   :  { %2178 = sst [smem:[#allocation32_spill]] %s1673_s28  ;;  %v393_v39 = vmul.f32 %v392_v30, %v1675_v19  ;;  %v499_v30 = vadd.f32 %v498_v15, %v495_v14 }
  0xc8   :  { %2179 = sst [smem:[#allocation36_spill]] %s1678_s9 }
  0xc9   :  { %s1691_s21 = sld [smem:[#allocation8 + $0x201]]  ;;  %v394_v7 = vadd.f32 %v393_v39, %v390_v38  ;;  %v534_v58 = vstv %s1682_s0  ;;  %v505_v38 = vstv %s1651_s11  ;;  %v443_v39 = vstv %s1572_s16 }
  0xca   :  { %s2181_s9 = sld [smem:[#allocation29_spill]]  ;;  %v535_v8 = vmul.f32 %v534_v58, %v1544_v36  ;;  %v537_v11 = vstv %s1687_s14  ;;  %v503_v51 = vadd.f32 %v502_v31, %v499_v30  ;;  %v1797_v59 = vmul.f32 %v443_v39, %v1716_v52 }
  0xcb   :  { %s1694_s28 = sld [smem:[#allocation8 + $0x202]] }
  0xcc   :  { %s1699_s13 = sld [smem:[#allocation8 + $0x203]]  ;;  %v396_v41 = vstv %s2180_s1  ;;  %v538_v22 = vadd.f32 %v537_v11, %v535_v8  ;;  %v513_v11 = vstv %s1660_s4 }
  0xcd   :  { %s1703_s3 = sld [smem:[#allocation8 + $0x204]]  ;;  %v397_v53 = vmul.f32 %v396_v41, %v1696_v33 }
  0xce   :  { %s2182_s23 = sld [smem:[#allocation25_spill]] }
  0xcf   :  { %s1707_s7 = sld [smem:[#allocation8 + $0x205]]  ;;  %v398_v4 = vadd.f32 %v397_v53, %v394_v7  ;;  %v540_v12 = vstv %s1691_s21  ;;  %v506_v7 = vmul.f32 %v505_v38, %v1558_v46 }
  0xd0   :  { %v427_v47 = vstv %s2181_s9  ;;  %s1710_s17 = sld [smem:[#allocation8 + $0x206]]  ;;  %v541_v23 = vmul.f32 %v540_v12, %v1546_v37 }
  0xd1   :  { %s1714_s19 = sld [smem:[#allocation8 + $0x207]]  ;;  %v428_v57 = vmul.f32 %v427_v47, %v1633_v49  ;;  %v544_v27 = vstv %s1694_s28 }
  0xd2   :  { %s1720_s1 = sld [smem:[#allocation8 + $0x208]]  ;;  %v542_v41 = vadd.f32 %v541_v23, %v538_v22  ;;  %v545_v42 = vmul.f32 %v544_v27, %v1556_v44  ;;  %v548_v47 = vstv %s1699_s13  ;;  %v486_v27 = vstv %s1626_s8 }
  0xd3   :  { %s1725_s9 = sld [smem:[#allocation8 + $0x209]]  ;;  %v429_v9 = vadd.f32 %v428_v57, %v425_v56  ;;  %v478_v56 = vstv %s1617_s12  ;;  %v509_v57 = vstv %s1655_s29  ;;  %v549_v61 = vmul.f32 %v548_v47, %v1558_v46 }
  0xd4   :  { %v400_v55 = vstv %s2182_s23  ;;  %s1730_s6 = sld [smem:[#allocation8 + $0x280]]  ;;  %v546_v60 = vadd.f32 %v545_v42, %v542_v41  ;;  %v552_v63 = vstv %s1703_s3  ;;  %v510_v6 = vmul.f32 %v509_v57, %v1584_v2 }
  0xd5   :  { %s1735_s24 = sld [smem:[#allocation9 + $0x5]]  ;;  %v401_v20 = vmul.f32 %v400_v55, %v1716_v52  ;;  %v433_v26 = vadd.f32 %v432_v10, %v429_v9  ;;  %v475_v55 = vmul.f32 %v474_v40, %v1657_v5  ;;  %v482_v10 = vstv %s1622_s27 }
  0xd6   :  { %s1740_s22 = sld [smem:[#allocation8 + $0x281]]  ;;  %v553_v14 = vmul.f32 %v552_v63, %v1584_v2  ;;  %v556_v17 = vstv %s1707_s7  ;;  %v483_v22 = vmul.f32 %v482_v10, %v1696_v33  ;;  %v560_v38 = vstv %s1710_s17 }
  0xd7   :  { %s1745_s26 = sld [smem:[#allocation8 + $0x282]]  ;;  %v1761_v25 = vadd.f32 %v401_v20, %v398_v4  ;;  %v437_v43 = vadd.f32 %v436_v13, %v433_v26  ;;  %v479_v4 = vmul.f32 %v478_v56, %v1675_v19  ;;  %v507_v20 = vadd.f32 %v506_v7, %v503_v51 }
  0xd8   :  { %s1749_s18 = sld [smem:[#allocation8 + $0x283]]  ;;  %v476_v9 = vadd.f32 %v475_v55, %v472_v54  ;;  %v550_v13 = vadd.f32 %v549_v61, %v546_v60  ;;  %v487_v41 = vmul.f32 %v486_v27, %v1716_v52  ;;  %v561_v56 = vmul.f32 %v560_v38, %v1657_v5 }
  0xd9   :  { %s1754_s30 = sld [smem:[#allocation8 + $0x284]]  ;;  %v403_v58 = vmax.f32 %v1761_v25, 0.0  ;;  %v1802_v62 = vadd.f32 %v440_v0, %v437_v43  ;;  %v511_v23 = vadd.f32 %v510_v6, %v507_v20  ;;  %v557_v0 = vmul.f32 %v556_v17, %v1633_v49 }
  0xda   :  { %v577_v24 = vstv %s1730_s6  ;;  %s1759_s15 = sld [smem:[#allocation8 + $0x285]] }
  0xdb   :  { %v578_v29 = vmul.f32 %v577_v24, %v1544_v36  ;;  %s1765_s2 = sld [smem:[#allocation8 + $0x286]]  ;;  %v580_v32 = vstv %s1735_s24  ;;  %v514_v24 = vmul.f32 %v513_v11, %v1633_v49 }
  0xdc   :  { %v583_v45 = vstv %s1740_s22  ;;  %s1770_s5 = sld [smem:[#allocation8 + $0x287]] }
  0xdd   :  { %s1775_s25 = sld [smem:[#allocation8 + $0x288]]  ;;  %v581_v48 = vadd.f32 %v580_v32, %v578_v29  ;;  %v584_v50 = vmul.f32 %v583_v45, %v1546_v37  ;;  %v587_v53 = vstv %s1745_s26  ;;  %v517_v29 = vstv %s1664_s10 }
  0xde   :  { %s1780_s28 = sld [smem:[#allocation8 + $0x289]]  ;;  %v588_v3 = vmul.f32 %v587_v53, %v1556_v44  ;;  %v591_v8 = vstv %s1749_s18  ;;  %v480_v32 = vadd.f32 %v479_v4, %v476_v9  ;;  %v554_v45 = vadd.f32 %v553_v14, %v550_v13 }
  0xdf   :  { %s1784_s0 = sld [smem:[#allocation8 + $0x300]]  ;;  %v585_v1 = vadd.f32 %v584_v50, %v581_v48  ;;  %v592_v28 = vmul.f32 %v591_v8, %v1558_v46  ;;  %v595_v26 = vstv %s1754_s30  ;;  %v515_v42 = vadd.f32 %v514_v24, %v511_v23 }
  0xe0   :  { %s1788_s16 = sld [smem:[#allocation9 + $0x6]]  ;;  %v596_v40 = vmul.f32 %v595_v26, %v1584_v2  ;;  %v518_v43 = vmul.f32 %v517_v29, %v1657_v5  ;;  %v599_v47 = vstv %s1759_s15  ;;  %v564_v48 = vstv %s1714_s19 }
  0xe1   :  { %s1793_s20 = sld [smem:[#allocation8 + $0x301]]  ;;  %v589_v18 = vadd.f32 %v588_v3, %v585_v1  ;;  %v484_v53 = vadd.f32 %v483_v22, %v480_v32  ;;  %v558_v55 = vadd.f32 %v557_v0, %v554_v45  ;;  %v600_v61 = vmul.f32 %v599_v47, %v1633_v49 }
  0xe2   :  { %s1800_s11 = sld [smem:[#allocation8 + $0x302]]  ;;  %v603_v63 = vstv %s1765_s2  ;;  %v519_v1 = vadd.f32 %v518_v43, %v515_v42  ;;  %v565_v3 = vmul.f32 %v564_v48, %v1675_v19  ;;  %v607_v22 = vstv %s1770_s5 }
  0xe3   :  { %s1806_s12 = sld [smem:[#allocation8 + $0x303]]  ;;  %v593_v39 = vadd.f32 %v592_v28, %v589_v18  ;;  %v562_v11 = vadd.f32 %v561_v56, %v558_v55  ;;  %v604_v13 = vmul.f32 %v603_v63, %v1657_v5  ;;  %v1901_v0 = vadd.f32 %v1797_v59, %v1802_v62 }
  0xe4   :  { %s1811_s29 = sld [smem:[#allocation8 + $0x304]]  ;;  %v608_v38 = vmul.f32 %v607_v22, %v1675_v19  ;;  %v611_v42 = vstv %s1775_s25  ;;  %v615_v55 = vstv %s1780_s28 }
  0xe5   :  { %v620_v12 = vstv %s1784_s0  ;;  %s1816_s14 = sld [smem:[#allocation8 + $0x305]]  ;;  %v597_v60 = vadd.f32 %v596_v40, %v593_v39  ;;  %v1907_v39 = vadd.f32 %v487_v41, %v484_v53 }
  0xe6   :  { %v621_v15 = vmul.f32 %v620_v12, %v1544_v36  ;;  %v623_v16 = vstv %s1788_s16  ;;  %s1821_s21 = sld [smem:[#allocation8 + $0x306]]  ;;  %v568_v12 = vstv %s1720_s1 }
  0xe7   :  { %v626_v21 = vstv %s1793_s20  ;;  %s1826_s27 = sld [smem:[#allocation8 + $0x307]]  ;;  %v569_v32 = vmul.f32 %v568_v12, %v1696_v33  ;;  %v616_v12 = vmul.f32 %v615_v55, %v1716_v52 }
  0xe8   :  { %s2183_s4 = sld [smem:[#allocation31_spill]]  ;;  %v624_v30 = vadd.f32 %v623_v16, %v621_v15  ;;  %v627_v31 = vmul.f32 %v626_v21, %v1546_v37  ;;  %v630_v34 = vstv %s1800_s11  ;;  %v601_v15 = vadd.f32 %v600_v61, %v597_v60 }
  0xe9   :  { %s1831_s13 = sld [smem:[#allocation8 + $0x308]]  ;;  %v631_v51 = vmul.f32 %v630_v34, %v1556_v44  ;;  %v634_v7 = vstv %s1806_s12  ;;  %v572_v34 = vstv %s1725_s9 }
  0xea   :  { %s1836_s3 = sld [smem:[#allocation8 + $0x309]]  ;;  %v628_v50 = vadd.f32 %v627_v31, %v624_v30  ;;  %v635_v4 = vmul.f32 %v634_v7, %v1558_v46  ;;  %v638_v8 = vstv %s1811_s29  ;;  %v566_v31 = vadd.f32 %v565_v3, %v562_v11 }
  0xeb   :  { %s1840_s23 = sld [smem:[#allocation8 + $0x380]]  ;;  %v639_v23 = vmul.f32 %v638_v8, %v1584_v2  ;;  %v642_v26 = vstv %s1816_s14 }
  0xec   :  { %s1845_s8 = sld [smem:[#allocation9 + $0x7]]  ;;  %v632_v6 = vadd.f32 %v631_v51, %v628_v50  ;;  %v643_v43 = vmul.f32 %v642_v26, %v1633_v49  ;;  %v646_v62 = vstv %s1821_s21  ;;  %v570_v50 = vadd.f32 %v569_v32, %v566_v31 }
  0xed   :  { %s2184_s10 = sld [smem:[#allocation32_spill]]  ;;  %v573_v51 = vmul.f32 %v572_v34, %v1716_v52  ;;  %v650_v60 = vstv %s1826_s27  ;;  %v489_v31 = vmax.f32 %v1907_v39, 0.0 }
  0xee   :  { %v521_v35 = vstv %s2183_s4  ;;  %s1850_s7 = sld [smem:[#allocation8 + $0x381]]  ;;  %v636_v24 = vadd.f32 %v635_v4, %v632_v6 }
  0xef   :  { %s1855_s17 = sld [smem:[#allocation8 + $0x382]]  ;;  %v522_v54 = vmul.f32 %v521_v35, %v1675_v19  ;;  %v605_v35 = vadd.f32 %v604_v13, %v601_v15  ;;  %v651_v15 = vmul.f32 %v650_v60, %v1675_v19 }
  0xf0   :  { %s1859_s6 = sld [smem:[#allocation8 + $0x383]]  ;;  %v640_v59 = vadd.f32 %v639_v23, %v636_v24 }
  0xf1   :  { %s1864_s19 = sld [smem:[#allocation8 + $0x384]]  ;;  %v663_v20 = vstv %s1840_s23  ;;  %v523_v30 = vadd.f32 %v522_v54, %v519_v1  ;;  %v609_v53 = vadd.f32 %v608_v38, %v605_v35  ;;  %v612_v54 = vmul.f32 %v611_v42, %v1696_v33 }
  0xf2   :  { %s1869_s24 = sld [smem:[#allocation8 + $0x385]]  ;;  %v664_v9 = vmul.f32 %v663_v20, %v1544_v36  ;;  %v666_v10 = vstv %s1845_s8  ;;  %v644_v1 = vadd.f32 %v643_v43, %v640_v59 }
  0xf3   :  { %v525_v57 = vstv %s2184_s10  ;;  %s2185_s22 = sld [smem:[#allocation36_spill]]  ;;  %v613_v11 = vadd.f32 %v612_v54, %v609_v53 }
  0xf4   :  { %s1874_s26 = sld [smem:[#allocation8 + $0x386]]  ;;  %v669_v14 = vstv %s1850_s7  ;;  %v667_v16 = vadd.f32 %v666_v10, %v664_v9  ;;  %v526_v28 = vmul.f32 %v525_v57, %v1696_v33  ;;  %v647_v57 = vmul.f32 %v646_v62, %v1657_v5 }
  0xf5   :  { %s1879_s18 = sld [smem:[#allocation8 + $0x387]]  ;;  %v670_v17 = vmul.f32 %v669_v14, %v1546_v37  ;;  %v673_v18 = vstv %s1855_s17  ;;  %v1969_v34 = vadd.f32 %v616_v12, %v613_v11 }
  0xf6   :  { %s1883_s30 = sld [smem:[#allocation8 + $0x388]]  ;;  %v674_v29 = vmul.f32 %v673_v18, %v1556_v44  ;;  %v677_v45 = vstv %s1859_s6  ;;  %v527_v41 = vadd.f32 %v526_v28, %v523_v30  ;;  %v654_v28 = vstv %s1831_s13 }
  0xf7   :  { %s1889_s1 = sld [smem:[#allocation8 + $0x389]]  ;;  %v671_v27 = vadd.f32 %v670_v17, %v667_v16  ;;  %v678_v48 = vmul.f32 %v677_v45, %v1558_v46  ;;  %v681_v7 = vstv %s1864_s19  ;;  %v648_v24 = vadd.f32 %v647_v57, %v644_v1 }
  0xf8   :  { %s1893_s15 = sld [smem:[#allocation8 + $0x400]]  ;;  %v682_v4 = vmul.f32 %v681_v7, %v1584_v2  ;;  %v685_v6 = vstv %s1869_s24  ;;  %v446_v30 = vmax.f32 %v1901_v0, 0.0  ;;  %v1965_v45 = vadd.f32 %v573_v51, %v570_v50 }
  0xf9   :  { %v529_v21 = vstv %s2185_s22  ;;  %s1897_s2 = sld [smem:[#allocation9 + $0x8]]  ;;  %v675_v47 = vadd.f32 %v674_v29, %v671_v27  ;;  %v686_v22 = vmul.f32 %v685_v6, %v1633_v49  ;;  %v655_v43 = vmul.f32 %v654_v28, %v1696_v33 }
  0xfa   :  { %s1905_s5 = sld [smem:[#allocation8 + $0x401]]  ;;  %v530_v40 = vmul.f32 %v529_v21, %v1716_v52  ;;  %v689_v26 = vstv %s1874_s26 }
  0xfb   :  { %s1912_s0 = sld [smem:[#allocation8 + $0x402]]  ;;  %v679_v3 = vadd.f32 %v678_v48, %v675_v47  ;;  %v690_v59 = vmul.f32 %v689_v26, %v1657_v5  ;;  %v693_v62 = vstv %s1879_s18  ;;  %v652_v47 = vadd.f32 %v651_v15, %v648_v24 }
  0xfc   :  { %s1916_s9 = sld [smem:[#allocation8 + $0x403]]  ;;  %v1963_v32 = vadd.f32 %v530_v40, %v527_v41  ;;  %v658_v48 = vstv %s1836_s3  ;;  %v694_v55 = vmul.f32 %v693_v62, %v1675_v19 }
  0xfd   :  { %s1920_s25 = sld [smem:[#allocation8 + $0x404]]  ;;  %v683_v21 = vadd.f32 %v682_v4, %v679_v3  ;;  %v659_v12 = vmul.f32 %v658_v48, %v1716_v52  ;;  %v701_v15 = vstv %s1889_s1 }
  0xfe   :  { %v706_v56 = vstv %s1893_s15  ;;  %s1925_s16 = sld [smem:[#allocation8 + $0x405]] }
  0xff   :  { %v707_v61 = vmul.f32 %v706_v56, %v1544_v36  ;;  %v709_v63 = vstv %s1897_s2  ;;  %s1931_s20 = sld [smem:[#allocation8 + $0x406]]  ;;  %v687_v40 = vadd.f32 %v686_v22, %v683_v21  ;;  %v697_v56 = vstv %s1883_s30 }
 0x100   :  { %v712_v20 = vstv %s1905_s5  ;;  %s1935_s28 = sld [smem:[#allocation8 + $0x407]] }
 0x101   :  { %v710_v8 = vadd.f32 %v709_v63, %v707_v61  ;;  %v713_v9 = vmul.f32 %v712_v20, %v1546_v37  ;;  %v716_v10 = vstv %s1912_s0  ;;  %s1940_s11 = sld [smem:[#allocation8 + $0x408]]  ;;  %v691_v61 = vadd.f32 %v690_v59, %v687_v40 }
 0x102   :  { %v717_v13 = vmul.f32 %v716_v10, %v1556_v44  ;;  %v720_v14 = vstv %s1916_s9  ;;  %s1945_s12 = sld [smem:[#allocation8 + $0x409]] }
 0x103   :  { %v714_v16 = vadd.f32 %v713_v9, %v710_v8  ;;  %v721_v17 = vmul.f32 %v720_v14, %v1558_v46  ;;  %v724_v18 = vstv %s1920_s25  ;;  %s1950_s29 = sld [smem:[#allocation8 + $0x480]] }
 0x104   :  { %v728_v23 = vstv %s1925_s16  ;;  %s1955_s14 = sld [smem:[#allocation9 + $0x9]]  ;;  %v725_v29 = vmul.f32 %v724_v18, %v1584_v2  ;;  %v575_v18 = vmax.f32 %v1965_v45, 0.0 }
 0x105   :  { %v718_v27 = vadd.f32 %v717_v13, %v714_v16  ;;  %s1959_s21 = sld [smem:[#allocation8 + $0x481]]  ;;  %v729_v38 = vmul.f32 %v728_v23, %v1633_v49  ;;  %v732_v42 = vstv %s1931_s20  ;;  %v698_v13 = vmul.f32 %v697_v56, %v1696_v33 }
 0x106   :  { %s1967_s27 = sld [smem:[#allocation8 + $0x482]]  ;;  %v733_v51 = vmul.f32 %v732_v42, %v1657_v5  ;;  %v736_v7 = vstv %s1935_s28 }
 0x107   :  { %v722_v35 = vadd.f32 %v721_v17, %v718_v27  ;;  %s1973_s4 = sld [smem:[#allocation8 + $0x483]]  ;;  %v740_v4 = vstv %s1940_s11 }
 0x108   :  { %s1978_s13 = sld [smem:[#allocation8 + $0x484]]  ;;  %v741_v28 = vmul.f32 %v740_v4, %v1696_v33  ;;  %v744_v23 = vstv %s1945_s12 }
 0x109   :  { %v726_v41 = vadd.f32 %v725_v29, %v722_v35  ;;  %v749_v50 = vstv %s1950_s29  ;;  %s1982_s23 = sld [smem:[#allocation8 + $0x485]]  ;;  %v702_v29 = vmul.f32 %v701_v15, %v1716_v52 }
 0x10a   :  { %v750_v53 = vmul.f32 %v749_v50, %v1544_v36  ;;  %v752_v54 = vstv %s1955_s14  ;;  %s1988_s8 = sld [smem:[#allocation8 + $0x486]]  ;;  %v737_v36 = vmul.f32 %v736_v7, %v1675_v19 }
 0x10b   :  { %v730_v57 = vadd.f32 %v729_v38, %v726_v41  ;;  %v755_v60 = vstv %s1959_s21  ;;  %s1993_s3 = sld [smem:[#allocation8 + $0x487]]  ;;  %s1243_s21 = smov [#allocation15]  }
 0x10c   :  { %v753_v63 = vadd.f32 %v752_v54, %v750_v53  ;;  %v756_v1 = vmul.f32 %v755_v60, %v1546_v37  ;;  %v759_v3 = vstv %s1967_s27  ;;  %s1997_s10 = sld [smem:[#allocation8 + $0x488]]  ;;  %v656_v37 = vadd.f32 %v655_v43, %v652_v47  ;;  %s882_s27 = sshll.u32 %s1243_s21, 4  ;;  %s883_s27 = int_to_ptr.vmem [resolvable:$true] %s882_s27 }
 0x10d   :  { %v760_v20 = vmul.f32 %v759_v3, %v1556_v44  ;;  %v763_v6 = vstv %s1973_s4  ;;  %s2003_s7 = sld [smem:[#allocation8 + $0x489]]  ;;  %v734_v8 = vadd.f32 %v733_v51, %v730_v57  ;;  %v695_v44 = vadd.f32 %v694_v55, %v691_v61 }
 0x10e   :  { %v757_v9 = vadd.f32 %v756_v1, %v753_v63  ;;  %v764_v10 = vmul.f32 %v763_v6, %v1558_v46  ;;  %v767_v11 = vstv %s1978_s13  ;;  %s2007_s17 = sld [smem:[#allocation11]]  ;;  %v532_v46 = vmax.f32 %v1963_v32, 0.0 }
 0x10f   :  { %v771_v14 = vstv %s1982_s23  ;;  %s2012_s6 = sld [smem:[#allocation12]]  ;;  %v768_v17 = vmul.f32 %v767_v11, %v1584_v2  ;;  %v738_v22 = vadd.f32 %v737_v36, %v734_v8  ;;  %v618_v2 = vmax.f32 %v1969_v34, 0.0 }
 0x110   :  { %v761_v16 = vadd.f32 %v760_v20, %v757_v9  ;;  %s2016_s19 = sld [smem:[#allocation11 + $0x1]]  ;;  %v775_v21 = vstv %s1988_s8  ;;  %v772_v26 = vmul.f32 %v771_v14, %v1633_v49  ;;  %v2029_v27 = vadd.f32 %v659_v12, %v656_v37 }
 0x111   :  { %s2022_s24 = sld [smem:[#allocation11 + $0x2]]  ;;  %v779_v35 = vstv %s1993_s3  ;;  %v699_v38 = vadd.f32 %v698_v13, %v695_v44  ;;  %v776_v43 = vmul.f32 %v775_v21, %v1657_v5  ;;  %v745_v49 = vmul.f32 %v744_v23, %v1716_v52  ;;  %s2187_s3 = smov 8  }
 0x112   :  { %v765_v24 = vadd.f32 %v764_v10, %v761_v16  ;;  %s2026_s22 = sld [smem:[#allocation11 + $0x3]]  ;;  %v783_v59 = vstv %s1997_s10  ;;  %v742_v48 = vadd.f32 %v741_v28, %v738_v22  ;;  %v780_v50 = vmul.f32 %v779_v35, %v1675_v19  ;;  %s2188_s10 = smov 128  }
 0x113   :  { %s2033_s26 = sld [smem:[#allocation11 + $0x4]]  ;;  %v787_v51 = vstv %s2003_s7  ;;  %v784_v56 = vmul.f32 %v783_v59, %v1696_v33  ;;  %v2062_v60 = vadd.f32 %v702_v29, %v699_v38  ;;  %v661_v4 = vmax.f32 %v2029_v27, 0.0 }
 0x114   :  { %v769_v42 = vadd.f32 %v768_v17, %v765_v24  ;;  %v792_v40 = vstv %s2007_s17  ;;  %s2037_s18 = sld [smem:[#allocation11 + $0x5]]  ;;  %v788_v36 = vmul.f32 %v787_v51, %v1716_v52  ;;  %v746_v20 = vadd.f32 %v745_v49, %v742_v48 }
 0x115   :  { %v793_v62 = vmul.f32 %v792_v40, %v403_v58  ;;  %v795_v47 = vstv %s2012_s6  ;;  %s2044_s30 = sld [smem:[#allocation11 + $0x6]]  ;;  %v704_v11 = vmax.f32 %v2062_v60, 0.0 }
 0x116   :  { %v773_v41 = vadd.f32 %v772_v26, %v769_v42  ;;  %v798_v5 = vstv %s2016_s19  ;;  %s2048_s1 = sld [smem:[#allocation11 + $0x7]]  ;;  %v747_v14 = vmax.f32 %v746_v20, 0.0 }
 0x117   :  { %v796_v7 = vadd.f32 %v795_v47, %v793_v62  ;;  %v799_v53 = vmul.f32 %v798_v5, %v446_v30  ;;  %v802_v54 = vstv %s2022_s24  ;;  %s2054_s15 = sld [smem:[#allocation11 + $0x8]] }
 0x118   :  { %v777_v55 = vadd.f32 %v776_v43, %v773_v41  ;;  %v803_v57 = vmul.f32 %v802_v54, %v489_v31  ;;  %v806_v19 = vstv %s2026_s22  ;;  %s2060_s2 = sld [smem:[#allocation11 + $0x9]] }
 0x119   :  { %v800_v61 = vadd.f32 %v799_v53, %v796_v7  ;;  %v807_v63 = vmul.f32 %v806_v19, %v532_v46  ;;  %v810_v1 = vstv %s2033_s26  ;;  %s1081_s5 = sld [smem:[#allocation11 + $0x80]] }
 0x11a   :  { %v781_v3 = vadd.f32 %v780_v50, %v777_v55  ;;  %v814_v33 = vstv %s2037_s18  ;;  %s2069_s0 = sld [smem:[#allocation12 + $0x1]]  ;;  %v811_v8 = vmul.f32 %v810_v1, %v575_v18 }
 0x11b   :  { %v804_v6 = vadd.f32 %v803_v57, %v800_v61  ;;  %s1083_s9 = sld [smem:[#allocation11 + $0x81]]  ;;  %v818_v10 = vstv %s2044_s30  ;;  %v815_v37 = vmul.f32 %v814_v33, %v618_v2 }
 0x11c   :  { %v785_v9 = vadd.f32 %v784_v56, %v781_v3  ;;  %s1084_s25 = sld [smem:[#allocation11 + $0x82]]  ;;  %v822_v13 = vstv %s2048_s1  ;;  %v819_v15 = vmul.f32 %v818_v10, %v661_v4 }
 0x11d   :  { %v808_v52 = vadd.f32 %v807_v63, %v804_v6  ;;  %s1085_s16 = sld [smem:[#allocation11 + $0x83]]  ;;  %v826_v17 = vstv %s2054_s15  ;;  %v823_v24 = vmul.f32 %v822_v13, %v704_v11 }
 0x11e   :  { %v789_v12 = vadd.f32 %v788_v36, %v785_v9  ;;  %s2079_s20 = sld [smem:[#allocation11 + $0x84]]  ;;  %v830_v27 = vstv %s2060_s2  ;;  %v827_v25 = vmul.f32 %v826_v17, %v747_v14 }
 0x11f   :  { %v812_v44 = vadd.f32 %v811_v8, %v808_v52  ;;  %v834_v16 = vstv %s1081_s5  ;;  %s2081_s28 = sld [smem:[#allocation11 + $0x85]] }
 0x120   :  { %v835_v28 = vmul.f32 %v834_v16, %v403_v58  ;;  %v837_v21 = vstv %s2069_s0  ;;  %s2087_s11 = sld [smem:[#allocation11 + $0x86]]  ;;  %v790_v22 = vmax.f32 %v789_v12, 0.0 }
 0x121   :  { %v816_v23 = vadd.f32 %v815_v37, %v812_v44  ;;  %v840_v26 = vstv %s1083_s9  ;;  %s1089_s12 = sld [smem:[#allocation11 + $0x87]] }
 0x122   :  { %v838_v29 = vadd.f32 %v837_v21, %v835_v28  ;;  %v841_v35 = vmul.f32 %v840_v26, %v446_v30  ;;  %v844_v38 = vstv %s1084_s25  ;;  %s1090_s29 = sld [smem:[#allocation11 + $0x88]]  ;;  %v831_v47 = vmul.f32 %v830_v27, %v790_v22 }
 0x123   :  { %v820_v42 = vadd.f32 %v819_v15, %v816_v23  ;;  %v845_v58 = vmul.f32 %v844_v38, %v489_v31  ;;  %v848_v43 = vstv %s1085_s16  ;;  %s1091_s14 = sld [smem:[#allocation11 + $0x89]] }
 0x124   :  { %v842_v40 = vadd.f32 %v841_v35, %v838_v29  ;;  %v849_v49 = vmul.f32 %v848_v43, %v532_v46  ;;  %v852_v59 = vstv %s2079_s20  ;;  %s2186_s23 = sld [smem:[#allocation44_spill]] }
 0x125   :  { %v824_v62 = vadd.f32 %v823_v24, %v820_v42  ;;  %v856_v48 = vstv %s2081_s28  ;;  %v853_v30 = vmul.f32 %v852_v59, %v575_v18 }
 0x126   :  { %v846_v0 = vadd.f32 %v845_v58, %v842_v40  ;;  %v860_v50 = vstv %s2087_s11  ;;  %v857_v39 = vmul.f32 %v856_v48, %v618_v2 }
 0x127   :  { %v828_v41 = vadd.f32 %v827_v25, %v824_v62  ;;  %v864_v51 = vstv %s1089_s12  ;;  %v861_v32 = vmul.f32 %v860_v50, %v661_v4 }
 0x128   :  { %v850_v5 = vadd.f32 %v849_v49, %v846_v0  ;;  %v868_v46 = vstv %s1090_s29  ;;  %v865_v54 = vmul.f32 %v864_v51, %v704_v11 }
 0x129   :  { %v832_v31 = vadd.f32 %v831_v47, %v828_v41  ;;  %v872_v55 = vstv %s1091_s14  ;;  %v869_v57 = vmul.f32 %v868_v46, %v747_v14 }
 0x12a   :  { %v854_v7 = vadd.f32 %v853_v30, %v850_v5  ;;  %v873_v45 = vmul.f32 %v872_v55, %v790_v22  ;;  %s884_s8 = sshll.u32 %s2186_s23, 4  ;;  %s885_s8 = int_to_ptr.hbm [resolvable:$true] %s884_s8 }
 0x12b   :  { %875 = vst [vmem:[#allocation15] sm:$0xff] %v832_v31 }
 0x12c   :  { %v858_v53 = vadd.f32 %v857_v39, %v854_v7 }
 0x12e   :  { %v862_v56 = vadd.f32 %v861_v32, %v858_v53 }
 0x130   :  { %v866_v19 = vadd.f32 %v865_v54, %v862_v56 }
 0x132   :  { %v870_v34 = vadd.f32 %v869_v57, %v866_v19 }
 0x134   :  { %v874_v18 = vadd.f32 %v873_v45, %v870_v34 }
 0x136   :  { %877 = vst [vmem:[#allocation15 + $0x8] sm:$0xff] %v874_v18 }
 0x137   :  { %890 = dma.vmem_to_hbm [thread:$0]  %s883_s27, 256, %s885_s8, [#allocation4], %s2188_s10, %s2188_s10, %s2187_s3  }
 0x138   :  { %1232 = dma.done.wait [#allocation4], 256  }
 0x139   :  { %1233 = vsyncadd [#allocation4], 4294967040 }
 0x13a   :  { %895 = vsyncpa [#allocation3], 1 }
 0x13b   :  { %896 = vsyncpa [#allocation4], 1 }
 0x13c   :  { %897 = vsyncpa [#allocation5], 1 }
 0x13d   :  { %898 = vsyncpa [#allocation7], 1 }
 0x13e   :  { %899 = vsyncpa [#allocation10], 1 }
 0x13f   :  { %900 = vsyncpa [#allocation13], 1 }

</bundles_post_ra>
